<compile_context>
chip_gen: v7x
topology: tpu7x:2x2x1
jax: 0.10.0
libtpu: 0.0.40
codegen_flags: <defaults>
</compile_context>

<pallas_src>
import jax
import jax.numpy as jnp
from jax.experimental import pallas as pl
from jax.experimental.pallas import tpu as pltpu

# ----- model hyper-params (small, consistent with the module) ---------------
B = 2          # batch
N = 8          # sequence length
DIM = 32       # embedding dim
HEADS = 4      # heads
DH = 16        # dim_head
INNER = HEADS * DH        # 64
SCALE = DH ** -0.5
LN_EPS = 1e-5             # PyTorch nn.LayerNorm default


# ----------------------------- Pallas kernel --------------------------------
def reattention_kernel(x_ref, wqkv_ref, wo_ref, scal_ref, o_ref):
    # x_ref   : (bb*N, DIM)        VMEM   (bb = batch rows handled this step)
    # wqkv_ref: (DIM, 3*INNER)     VMEM
    # wo_ref  : (INNER+8, DIM)     VMEM   rows [0:INNER)=W_out, row INNER=b_out
    # scal_ref: (HEADS+2, HEADS)   SMEM   rows [0:H)=reattn_w, row H=gamma, H+1=beta
    # o_ref   : (bb*N, DIM)        VMEM
    bb = x_ref.shape[0] // N

    # 1) QKV projection: one (bb*N, DIM) @ (DIM, 3*INNER) MXU matmul, kept as a
    #    register value (no scratch staging).
    qkv = jnp.dot(x_ref[...], wqkv_ref[...],
                  preferred_element_type=jnp.float32)            # (bb*N, 3*INNER)
    qkv3 = qkv.reshape(bb, N, 3 * INNER)                         # free sublane split

    # 2) Per-head softmax(Q K^T * scale), batched over the batch dim.
    p_heads = []
    v_heads = []
    for h in range(HEADS):
        q3 = qkv3[:, :, h * DH:(h + 1) * DH]                            # (bb,N,DH)
        k3 = qkv3[:, :, INNER + h * DH: INNER + (h + 1) * DH]           # (bb,N,DH)
        v_heads.append(qkv3[:, :, 2 * INNER + h * DH: 2 * INNER + (h + 1) * DH])
        s3 = jnp.einsum('bqd,bkd->bqk', q3, k3,
                        preferred_element_type=jnp.float32) * SCALE     # (bb,N,N)
        s3 = s3 - jnp.max(s3, axis=-1, keepdims=True)
        e3 = jnp.exp(s3)
        # Exact softmax normalization (approx reciprocal removed: it was the
        # source of the >2e-3 error after the cross-head LayerNorm).
        p_heads.append(e3 / jnp.sum(e3, axis=-1, keepdims=True))

    # 3) Re-attention mixing across heads: H*H scalar-weighted adds on the VPU
    #    (no kron(rw, I_N) matmul, no (H*N,H*N) weight DMA).
    mixed = []
    for g in range(HEADS):
        acc = scal_ref[0, g] * p_heads[0]
        for h in range(1, HEADS):
            acc = acc + scal_ref[h, g] * p_heads[h]
        mixed.append(acc)                                        # (bb,N,N)

    # 4) LayerNorm over the head axis (per (b, i, j) position), as plain
    #    H-array reductions on the VPU.
    mu = mixed[0]
    for g in range(1, HEADS):
        mu = mu + mixed[g]
    mu = mu * (1.0 / HEADS)
    var = (mixed[0] - mu) * (mixed[0] - mu)
    for g in range(1, HEADS):
        d = mixed[g] - mu
        var = var + d * d
    var = var * (1.0 / HEADS)
    rstd = jax.lax.rsqrt(var + LN_EPS)

    # 5) attn @ V per head (batched over batch), concatenated in registers.
    outs = []
    for g in range(HEADS):
        a_g = (mixed[g] - mu) * rstd * scal_ref[HEADS, g] + scal_ref[HEADS + 1, g]
        outs.append(jnp.einsum('bij,bjd->bid', a_g, v_heads[g],
                               preferred_element_type=jnp.float32))     # (bb,N,DH)
    o_cat = jnp.concatenate(outs, axis=-1).reshape(bb * N, INNER)       # (bb*N,INNER)

    # 6) Fused output projection + bias from the packed (INNER+8, DIM) slab.
    w_out = wo_ref[0:INNER, :]
    b_out = wo_ref[INNER:INNER + 1, :]
    out = jnp.dot(o_cat, w_out, preferred_element_type=jnp.float32) + b_out
    o_ref[...] = out.astype(o_ref.dtype)


# -------------------------- host-side param packing --------------------------
def pack_params(rw, gamma, beta, w_out, b_out):
    """One-time packing (hoisted out of the per-call path)."""
    wo_slab = jnp.concatenate(
        [w_out.astype(jnp.float32),
         b_out.reshape(1, DIM).astype(jnp.float32),
         jnp.zeros((7, DIM), jnp.float32)], axis=0)              # (INNER+8, DIM)
    scal = jnp.concatenate(
        [rw.astype(jnp.float32),
         gamma.reshape(1, HEADS).astype(jnp.float32),
         beta.reshape(1, HEADS).astype(jnp.float32)], axis=0)    # (HEADS+2, HEADS)
    return wo_slab, scal


def reattention_pallas(x, w_qkv, wo_slab, scal, *, batch_block=None):
    b, n, d = x.shape
    assert (n, d) == (N, DIM)
    bb = b if batch_block is None else batch_block
    assert b % bb == 0
    x2d = x.reshape(b * n, d)

    out2d = pl.pallas_call(
        reattention_kernel,
        out_shape=jax.ShapeDtypeStruct((b * n, d), x.dtype),
        grid_spec=pltpu.PrefetchScalarGridSpec(
            num_scalar_prefetch=0,
            grid=(b // bb,),                     # batch-tile axis (1 at test size)
            in_specs=[
                pl.BlockSpec((bb * N, DIM), lambda i: (i, 0)),        # x rows
                pl.BlockSpec((DIM, 3 * INNER), lambda i: (0, 0)),     # w_qkv
                pl.BlockSpec((INNER + 8, DIM), lambda i: (0, 0)),     # w_out|b_out
                pl.BlockSpec(memory_space=pltpu.MemorySpace.SMEM),    # rw|gamma|beta
            ],
            out_specs=pl.BlockSpec((bb * N, DIM), lambda i: (i, 0)),
        ),
        compiler_params=pltpu.CompilerParams(
            dimension_semantics=("parallel",)),  # shards batch tiles on v7x 2-TC
    )(x2d, w_qkv, wo_slab, scal)
    return out2d.reshape(b, n, d)


# --------------------------- pure-JAX reference ------------------------------
def reattention_ref(x, w_qkv, rw, gamma, beta, w_out, b_out):
    b, n, _ = x.shape
    qkv = x @ w_qkv
    q, k, v = jnp.split(qkv, 3, axis=-1)

    def to_heads(t):
        return t.reshape(b, n, HEADS, DH).transpose(0, 2, 1, 3)

    q, k, v = map(to_heads, (q, k, v))
    dots = jnp.einsum('bhid,bhjd->bhij', q, k) * SCALE
    attn = jax.nn.softmax(dots, axis=-1)
    attn = jnp.einsum('bhij,hg->bgij', attn, rw)
    mean = attn.mean(axis=1, keepdims=True)
    var = ((attn - mean) ** 2).mean(axis=1, keepdims=True)
    attn = (attn - mean) * jax.lax.rsqrt(var + LN_EPS)
    attn = attn * gamma[None, :, None, None] + beta[None, :, None, None]
    out = jnp.einsum('bhij,bhjd->bhid', attn, v)
    out = out.transpose(0, 2, 1, 3).reshape(b, n, INNER)
    return out @ w_out + b_out[0]


# ----------------------------------- main ------------------------------------
if __name__ == "__main__":
    # Make f32 matmuls full-precision on TPU so kernel and reference agree.
    jax.config.update("jax_default_matmul_precision", "highest")

    key = jax.random.PRNGKey(0)
    k_x, k_qkv, k_rw, k_wo, k_bo = jax.random.split(key, 5)

    x = jax.random.normal(k_x, (B, N, DIM), dtype=jnp.float32)
    w_qkv = jax.random.normal(k_qkv, (DIM, 3 * INNER), dtype=jnp.float32) * 0.05
    reattn_w = jax.random.normal(k_rw, (HEADS, HEADS), dtype=jnp.float32)
    ln_gamma = jnp.ones((HEADS,), jnp.float32)    # nn.LayerNorm default weight
    ln_beta = jnp.zeros((HEADS,), jnp.float32)    # nn.LayerNorm default bias
    w_out = jax.random.normal(k_wo, (INNER, DIM), dtype=jnp.float32) * 0.05
    b_out = jax.random.normal(k_bo, (1, DIM), dtype=jnp.float32) * 0.05
    # TODO(synk): dropout(p=0.0) in to_out is an inference no-op and is omitted.

    wo_slab, scal = pack_params(reattn_w, ln_gamma, ln_beta, w_out, b_out)

    out = reattention_pallas(x, w_qkv, wo_slab, scal)
    out = jax.block_until_ready(out)

    ref = reattention_ref(x, w_qkv, reattn_w, ln_gamma, ln_beta, w_out, b_out)
    assert out.shape == (B, N, DIM)
    err = jnp.max(jnp.abs(out - ref))
    assert jnp.allclose(out, ref, atol=1e-3, rtol=1e-3), f"max abs err {err}"

    print("KERNEL_OK")
</pallas_src>

<mosaic_0001>
module attributes {stable_mosaic.version = 11 : i64} {
  func.func @reattention_kernel(%arg0: i32, %arg1: memref<16x32xf32, #tpu.memory_space<vmem>>, %arg2: memref<32x192xf32, #tpu.memory_space<vmem>>, %arg3: memref<72x32xf32, #tpu.memory_space<vmem>>, %arg4: memref<6x4xf32, #tpu.memory_space<smem>>, %arg5: memref<16x32xf32, #tpu.memory_space<vmem>>) attributes {dimension_semantics = [#tpu.dimension_semantics<parallel>], iteration_bounds = array<i64: 1>, scalar_prefetch = 0 : i64, scratch_operands = 0 : i64, tpu.core_type = #tpu.core_type<tc>, window_params = [{transform_indices = @transform_0, window_bounds = array<i64: 16, 32>}, {pipeline_mode = #tpu.pipeline_mode<synchronous>, transform_indices = @transform_1, window_bounds = array<i64: 32, 192>}, {pipeline_mode = #tpu.pipeline_mode<synchronous>, transform_indices = @transform_2, window_bounds = array<i64: 72, 32>}, {transform_indices = @transform_3, window_bounds = array<i64: 6, 4>}, {transform_indices = @transform_4, window_bounds = array<i64: 16, 32>}]} {
    %c0 = arith.constant 0 : index
    %c0_0 = arith.constant 0 : index
    %0 = vector.load %arg1[%c0, %c0_0] : memref<16x32xf32, #tpu.memory_space<vmem>>, vector<16x32xf32>
    %c0_1 = arith.constant 0 : index
    %c0_2 = arith.constant 0 : index
    %1 = vector.load %arg2[%c0_1, %c0_2] : memref<32x192xf32, #tpu.memory_space<vmem>>, vector<32x192xf32>
    %cst = arith.constant dense<0.000000e+00> : vector<16x192xf32>
    %2 = tpu.matmul %0, %1, %cst {dimension_numbers = #tpu.dot_dimension_numbers<[1], [0], [0], [1], [0, 0, 1, 1], [], []>, precision = #tpu.contract_precision<fp32>} : vector<16x32xf32>, vector<32x192xf32>, vector<16x192xf32> -> vector<16x192xf32>
    %3 = vector.shape_cast %2 : vector<16x192xf32> to vector<2x8x192xf32>
    %4 = vector.extract_strided_slice %3 {offsets = [0, 0, 0], sizes = [2, 8, 16], strides = [1, 1, 1]} : vector<2x8x192xf32> to vector<2x8x16xf32>
    %5 = vector.extract_strided_slice %3 {offsets = [0, 0, 64], sizes = [2, 8, 16], strides = [1, 1, 1]} : vector<2x8x192xf32> to vector<2x8x16xf32>
    %6 = vector.extract_strided_slice %3 {offsets = [0, 0, 128], sizes = [2, 8, 16], strides = [1, 1, 1]} : vector<2x8x192xf32> to vector<2x8x16xf32>
    "tpu.trace_start"() <{level = 10 : i32, message = "bqd,bkd->bqk"}> : () -> ()
    %cst_3 = arith.constant dense<0.000000e+00> : vector<2x8x8xf32>
    %7 = tpu.matmul %4, %5, %cst_3 {dimension_numbers = #tpu.dot_dimension_numbers<[2], [2], [1], [1], [0, 0, 0, 1, 1, 1], [0], [0]>, precision = #tpu.contract_precision<fp32>} : vector<2x8x16xf32>, vector<2x8x16xf32>, vector<2x8x8xf32> -> vector<2x8x8xf32>
    "tpu.trace_stop"() : () -> ()
    %cst_4 = arith.constant 2.500000e-01 : f32
    %8 = vector.broadcast %cst_4 : f32 to vector<2x8x8xf32>
    %9 = arith.mulf %7, %8 : vector<2x8x8xf32>
    %cst_5 = arith.constant dense<0xFF800000> : vector<2x8xf32>
    %10 = vector.multi_reduction <maximumf>, %9, %cst_5 [2] : vector<2x8x8xf32> to vector<2x8xf32>
    %11 = vector.shape_cast %10 : vector<2x8xf32> to vector<2x8x1xf32>
    %12 = vector.broadcast %11 : vector<2x8x1xf32> to vector<2x8x8xf32>
    %13 = arith.subf %9, %12 : vector<2x8x8xf32>
    %14 = math.exp %13 : vector<2x8x8xf32>
    %cst_6 = arith.constant dense<0.000000e+00> : vector<2x8xf32>
    %15 = vector.multi_reduction <add>, %14, %cst_6 [2] : vector<2x8x8xf32> to vector<2x8xf32>
    %16 = vector.shape_cast %15 : vector<2x8xf32> to vector<2x8x1xf32>
    %17 = vector.broadcast %16 : vector<2x8x1xf32> to vector<2x8x8xf32>
    %18 = arith.divf %14, %17 : vector<2x8x8xf32>
    %19 = vector.extract_strided_slice %3 {offsets = [0, 0, 16], sizes = [2, 8, 16], strides = [1, 1, 1]} : vector<2x8x192xf32> to vector<2x8x16xf32>
    %20 = vector.extract_strided_slice %3 {offsets = [0, 0, 80], sizes = [2, 8, 16], strides = [1, 1, 1]} : vector<2x8x192xf32> to vector<2x8x16xf32>
    %21 = vector.extract_strided_slice %3 {offsets = [0, 0, 144], sizes = [2, 8, 16], strides = [1, 1, 1]} : vector<2x8x192xf32> to vector<2x8x16xf32>
    "tpu.trace_start"() <{level = 10 : i32, message = "bqd,bkd->bqk"}> : () -> ()
    %cst_7 = arith.constant dense<0.000000e+00> : vector<2x8x8xf32>
    %22 = tpu.matmul %19, %20, %cst_7 {dimension_numbers = #tpu.dot_dimension_numbers<[2], [2], [1], [1], [0, 0, 0, 1, 1, 1], [0], [0]>, precision = #tpu.contract_precision<fp32>} : vector<2x8x16xf32>, vector<2x8x16xf32>, vector<2x8x8xf32> -> vector<2x8x8xf32>
    "tpu.trace_stop"() : () -> ()
    %cst_8 = arith.constant 2.500000e-01 : f32
    %23 = vector.broadcast %cst_8 : f32 to vector<2x8x8xf32>
    %24 = arith.mulf %22, %23 : vector<2x8x8xf32>
    %cst_9 = arith.constant dense<0xFF800000> : vector<2x8xf32>
    %25 = vector.multi_reduction <maximumf>, %24, %cst_9 [2] : vector<2x8x8xf32> to vector<2x8xf32>
    %26 = vector.shape_cast %25 : vector<2x8xf32> to vector<2x8x1xf32>
    %27 = vector.broadcast %26 : vector<2x8x1xf32> to vector<2x8x8xf32>
    %28 = arith.subf %24, %27 : vector<2x8x8xf32>
    %29 = math.exp %28 : vector<2x8x8xf32>
    %cst_10 = arith.constant dense<0.000000e+00> : vector<2x8xf32>
    %30 = vector.multi_reduction <add>, %29, %cst_10 [2] : vector<2x8x8xf32> to vector<2x8xf32>
    %31 = vector.shape_cast %30 : vector<2x8xf32> to vector<2x8x1xf32>
    %32 = vector.broadcast %31 : vector<2x8x1xf32> to vector<2x8x8xf32>
    %33 = arith.divf %29, %32 : vector<2x8x8xf32>
    %34 = vector.extract_strided_slice %3 {offsets = [0, 0, 32], sizes = [2, 8, 16], strides = [1, 1, 1]} : vector<2x8x192xf32> to vector<2x8x16xf32>
    %35 = vector.extract_strided_slice %3 {offsets = [0, 0, 96], sizes = [2, 8, 16], strides = [1, 1, 1]} : vector<2x8x192xf32> to vector<2x8x16xf32>
    %36 = vector.extract_strided_slice %3 {offsets = [0, 0, 160], sizes = [2, 8, 16], strides = [1, 1, 1]} : vector<2x8x192xf32> to vector<2x8x16xf32>
    "tpu.trace_start"() <{level = 10 : i32, message = "bqd,bkd->bqk"}> : () -> ()
    %cst_11 = arith.constant dense<0.000000e+00> : vector<2x8x8xf32>
    %37 = tpu.matmul %34, %35, %cst_11 {dimension_numbers = #tpu.dot_dimension_numbers<[2], [2], [1], [1], [0, 0, 0, 1, 1, 1], [0], [0]>, precision = #tpu.contract_precision<fp32>} : vector<2x8x16xf32>, vector<2x8x16xf32>, vector<2x8x8xf32> -> vector<2x8x8xf32>
    "tpu.trace_stop"() : () -> ()
    %cst_12 = arith.constant 2.500000e-01 : f32
    %38 = vector.broadcast %cst_12 : f32 to vector<2x8x8xf32>
    %39 = arith.mulf %37, %38 : vector<2x8x8xf32>
    %cst_13 = arith.constant dense<0xFF800000> : vector<2x8xf32>
    %40 = vector.multi_reduction <maximumf>, %39, %cst_13 [2] : vector<2x8x8xf32> to vector<2x8xf32>
    %41 = vector.shape_cast %40 : vector<2x8xf32> to vector<2x8x1xf32>
    %42 = vector.broadcast %41 : vector<2x8x1xf32> to vector<2x8x8xf32>
    %43 = arith.subf %39, %42 : vector<2x8x8xf32>
    %44 = math.exp %43 : vector<2x8x8xf32>
    %cst_14 = arith.constant dense<0.000000e+00> : vector<2x8xf32>
    %45 = vector.multi_reduction <add>, %44, %cst_14 [2] : vector<2x8x8xf32> to vector<2x8xf32>
    %46 = vector.shape_cast %45 : vector<2x8xf32> to vector<2x8x1xf32>
    %47 = vector.broadcast %46 : vector<2x8x1xf32> to vector<2x8x8xf32>
    %48 = arith.divf %44, %47 : vector<2x8x8xf32>
    %49 = vector.extract_strided_slice %3 {offsets = [0, 0, 48], sizes = [2, 8, 16], strides = [1, 1, 1]} : vector<2x8x192xf32> to vector<2x8x16xf32>
    %50 = vector.extract_strided_slice %3 {offsets = [0, 0, 112], sizes = [2, 8, 16], strides = [1, 1, 1]} : vector<2x8x192xf32> to vector<2x8x16xf32>
    %51 = vector.extract_strided_slice %3 {offsets = [0, 0, 176], sizes = [2, 8, 16], strides = [1, 1, 1]} : vector<2x8x192xf32> to vector<2x8x16xf32>
    "tpu.trace_start"() <{level = 10 : i32, message = "bqd,bkd->bqk"}> : () -> ()
    %cst_15 = arith.constant dense<0.000000e+00> : vector<2x8x8xf32>
    %52 = tpu.matmul %49, %50, %cst_15 {dimension_numbers = #tpu.dot_dimension_numbers<[2], [2], [1], [1], [0, 0, 0, 1, 1, 1], [0], [0]>, precision = #tpu.contract_precision<fp32>} : vector<2x8x16xf32>, vector<2x8x16xf32>, vector<2x8x8xf32> -> vector<2x8x8xf32>
    "tpu.trace_stop"() : () -> ()
    %cst_16 = arith.constant 2.500000e-01 : f32
    %53 = vector.broadcast %cst_16 : f32 to vector<2x8x8xf32>
    %54 = arith.mulf %52, %53 : vector<2x8x8xf32>
    %cst_17 = arith.constant dense<0xFF800000> : vector<2x8xf32>
    %55 = vector.multi_reduction <maximumf>, %54, %cst_17 [2] : vector<2x8x8xf32> to vector<2x8xf32>
    %56 = vector.shape_cast %55 : vector<2x8xf32> to vector<2x8x1xf32>
    %57 = vector.broadcast %56 : vector<2x8x1xf32> to vector<2x8x8xf32>
    %58 = arith.subf %54, %57 : vector<2x8x8xf32>
    %59 = math.exp %58 : vector<2x8x8xf32>
    %cst_18 = arith.constant dense<0.000000e+00> : vector<2x8xf32>
    %60 = vector.multi_reduction <add>, %59, %cst_18 [2] : vector<2x8x8xf32> to vector<2x8xf32>
    %61 = vector.shape_cast %60 : vector<2x8xf32> to vector<2x8x1xf32>
    %62 = vector.broadcast %61 : vector<2x8x1xf32> to vector<2x8x8xf32>
    %63 = arith.divf %59, %62 : vector<2x8x8xf32>
    %c0_19 = arith.constant 0 : index
    %c0_20 = arith.constant 0 : index
    %64 = memref.load %arg4[%c0_19, %c0_20] : memref<6x4xf32, #tpu.memory_space<smem>>
    %65 = vector.broadcast %64 : f32 to vector<2x8x8xf32>
    %66 = arith.mulf %65, %18 : vector<2x8x8xf32>
    %c1 = arith.constant 1 : index
    %c0_21 = arith.constant 0 : index
    %67 = memref.load %arg4[%c1, %c0_21] : memref<6x4xf32, #tpu.memory_space<smem>>
    %68 = vector.broadcast %67 : f32 to vector<2x8x8xf32>
    %69 = arith.mulf %68, %33 : vector<2x8x8xf32>
    %70 = arith.addf %66, %69 : vector<2x8x8xf32>
    %c2 = arith.constant 2 : index
    %c0_22 = arith.constant 0 : index
    %71 = memref.load %arg4[%c2, %c0_22] : memref<6x4xf32, #tpu.memory_space<smem>>
    %72 = vector.broadcast %71 : f32 to vector<2x8x8xf32>
    %73 = arith.mulf %72, %48 : vector<2x8x8xf32>
    %74 = arith.addf %70, %73 : vector<2x8x8xf32>
    %c3 = arith.constant 3 : index
    %c0_23 = arith.constant 0 : index
    %75 = memref.load %arg4[%c3, %c0_23] : memref<6x4xf32, #tpu.memory_space<smem>>
    %76 = vector.broadcast %75 : f32 to vector<2x8x8xf32>
    %77 = arith.mulf %76, %63 : vector<2x8x8xf32>
    %78 = arith.addf %74, %77 : vector<2x8x8xf32>
    %c0_24 = arith.constant 0 : index
    %c1_25 = arith.constant 1 : index
    %79 = memref.load %arg4[%c0_24, %c1_25] : memref<6x4xf32, #tpu.memory_space<smem>>
    %80 = vector.broadcast %79 : f32 to vector<2x8x8xf32>
    %81 = arith.mulf %80, %18 : vector<2x8x8xf32>
    %c1_26 = arith.constant 1 : index
    %c1_27 = arith.constant 1 : index
    %82 = memref.load %arg4[%c1_26, %c1_27] : memref<6x4xf32, #tpu.memory_space<smem>>
    %83 = vector.broadcast %82 : f32 to vector<2x8x8xf32>
    %84 = arith.mulf %83, %33 : vector<2x8x8xf32>
    %85 = arith.addf %81, %84 : vector<2x8x8xf32>
    %c2_28 = arith.constant 2 : index
    %c1_29 = arith.constant 1 : index
    %86 = memref.load %arg4[%c2_28, %c1_29] : memref<6x4xf32, #tpu.memory_space<smem>>
    %87 = vector.broadcast %86 : f32 to vector<2x8x8xf32>
    %88 = arith.mulf %87, %48 : vector<2x8x8xf32>
    %89 = arith.addf %85, %88 : vector<2x8x8xf32>
    %c3_30 = arith.constant 3 : index
    %c1_31 = arith.constant 1 : index
    %90 = memref.load %arg4[%c3_30, %c1_31] : memref<6x4xf32, #tpu.memory_space<smem>>
    %91 = vector.broadcast %90 : f32 to vector<2x8x8xf32>
    %92 = arith.mulf %91, %63 : vector<2x8x8xf32>
    %93 = arith.addf %89, %92 : vector<2x8x8xf32>
    %c0_32 = arith.constant 0 : index
    %c2_33 = arith.constant 2 : index
    %94 = memref.load %arg4[%c0_32, %c2_33] : memref<6x4xf32, #tpu.memory_space<smem>>
    %95 = vector.broadcast %94 : f32 to vector<2x8x8xf32>
    %96 = arith.mulf %95, %18 : vector<2x8x8xf32>
    %c1_34 = arith.constant 1 : index
    %c2_35 = arith.constant 2 : index
    %97 = memref.load %arg4[%c1_34, %c2_35] : memref<6x4xf32, #tpu.memory_space<smem>>
    %98 = vector.broadcast %97 : f32 to vector<2x8x8xf32>
    %99 = arith.mulf %98, %33 : vector<2x8x8xf32>
    %100 = arith.addf %96, %99 : vector<2x8x8xf32>
    %c2_36 = arith.constant 2 : index
    %c2_37 = arith.constant 2 : index
    %101 = memref.load %arg4[%c2_36, %c2_37] : memref<6x4xf32, #tpu.memory_space<smem>>
    %102 = vector.broadcast %101 : f32 to vector<2x8x8xf32>
    %103 = arith.mulf %102, %48 : vector<2x8x8xf32>
    %104 = arith.addf %100, %103 : vector<2x8x8xf32>
    %c3_38 = arith.constant 3 : index
    %c2_39 = arith.constant 2 : index
    %105 = memref.load %arg4[%c3_38, %c2_39] : memref<6x4xf32, #tpu.memory_space<smem>>
    %106 = vector.broadcast %105 : f32 to vector<2x8x8xf32>
    %107 = arith.mulf %106, %63 : vector<2x8x8xf32>
    %108 = arith.addf %104, %107 : vector<2x8x8xf32>
    %c0_40 = arith.constant 0 : index
    %c3_41 = arith.constant 3 : index
    %109 = memref.load %arg4[%c0_40, %c3_41] : memref<6x4xf32, #tpu.memory_space<smem>>
    %110 = vector.broadcast %109 : f32 to vector<2x8x8xf32>
    %111 = arith.mulf %110, %18 : vector<2x8x8xf32>
    %c1_42 = arith.constant 1 : index
    %c3_43 = arith.constant 3 : index
    %112 = memref.load %arg4[%c1_42, %c3_43] : memref<6x4xf32, #tpu.memory_space<smem>>
    %113 = vector.broadcast %112 : f32 to vector<2x8x8xf32>
    %114 = arith.mulf %113, %33 : vector<2x8x8xf32>
    %115 = arith.addf %111, %114 : vector<2x8x8xf32>
    %c2_44 = arith.constant 2 : index
    %c3_45 = arith.constant 3 : index
    %116 = memref.load %arg4[%c2_44, %c3_45] : memref<6x4xf32, #tpu.memory_space<smem>>
    %117 = vector.broadcast %116 : f32 to vector<2x8x8xf32>
    %118 = arith.mulf %117, %48 : vector<2x8x8xf32>
    %119 = arith.addf %115, %118 : vector<2x8x8xf32>
    %c3_46 = arith.constant 3 : index
    %c3_47 = arith.constant 3 : index
    %120 = memref.load %arg4[%c3_46, %c3_47] : memref<6x4xf32, #tpu.memory_space<smem>>
    %121 = vector.broadcast %120 : f32 to vector<2x8x8xf32>
    %122 = arith.mulf %121, %63 : vector<2x8x8xf32>
    %123 = arith.addf %119, %122 : vector<2x8x8xf32>
    %124 = arith.addf %78, %93 : vector<2x8x8xf32>
    %125 = arith.addf %124, %108 : vector<2x8x8xf32>
    %126 = arith.addf %125, %123 : vector<2x8x8xf32>
    %cst_48 = arith.constant 2.500000e-01 : f32
    %127 = vector.broadcast %cst_48 : f32 to vector<2x8x8xf32>
    %128 = arith.mulf %126, %127 : vector<2x8x8xf32>
    %129 = arith.subf %78, %128 : vector<2x8x8xf32>
    %130 = arith.subf %78, %128 : vector<2x8x8xf32>
    %131 = arith.mulf %129, %130 : vector<2x8x8xf32>
    %132 = arith.subf %93, %128 : vector<2x8x8xf32>
    %133 = arith.mulf %132, %132 : vector<2x8x8xf32>
    %134 = arith.addf %131, %133 : vector<2x8x8xf32>
    %135 = arith.subf %108, %128 : vector<2x8x8xf32>
    %136 = arith.mulf %135, %135 : vector<2x8x8xf32>
    %137 = arith.addf %134, %136 : vector<2x8x8xf32>
    %138 = arith.subf %123, %128 : vector<2x8x8xf32>
    %139 = arith.mulf %138, %138 : vector<2x8x8xf32>
    %140 = arith.addf %137, %139 : vector<2x8x8xf32>
    %cst_49 = arith.constant 2.500000e-01 : f32
    %141 = vector.broadcast %cst_49 : f32 to vector<2x8x8xf32>
    %142 = arith.mulf %140, %141 : vector<2x8x8xf32>
    %cst_50 = arith.constant 9.99999974E-6 : f32
    %143 = vector.broadcast %cst_50 : f32 to vector<2x8x8xf32>
    %144 = arith.addf %142, %143 : vector<2x8x8xf32>
    %145 = math.rsqrt %144 : vector<2x8x8xf32>
    %146 = arith.subf %78, %128 : vector<2x8x8xf32>
    %147 = arith.mulf %146, %145 : vector<2x8x8xf32>
    %c4 = arith.constant 4 : index
    %c0_51 = arith.constant 0 : index
    %148 = memref.load %arg4[%c4, %c0_51] : memref<6x4xf32, #tpu.memory_space<smem>>
    %149 = vector.broadcast %148 : f32 to vector<2x8x8xf32>
    %150 = arith.mulf %147, %149 : vector<2x8x8xf32>
    %c5 = arith.constant 5 : index
    %c0_52 = arith.constant 0 : index
    %151 = memref.load %arg4[%c5, %c0_52] : memref<6x4xf32, #tpu.memory_space<smem>>
    %152 = vector.broadcast %151 : f32 to vector<2x8x8xf32>
    %153 = arith.addf %150, %152 : vector<2x8x8xf32>
    "tpu.trace_start"() <{level = 10 : i32, message = "bij,bjd->bid"}> : () -> ()
    %cst_53 = arith.constant dense<0.000000e+00> : vector<2x8x16xf32>
    %154 = tpu.matmul %153, %6, %cst_53 {dimension_numbers = #tpu.dot_dimension_numbers<[2], [1], [1], [2], [0, 0, 0, 1, 1, 2], [0], [0]>, precision = #tpu.contract_precision<fp32>} : vector<2x8x8xf32>, vector<2x8x16xf32>, vector<2x8x16xf32> -> vector<2x8x16xf32>
    "tpu.trace_stop"() : () -> ()
    %155 = arith.subf %93, %128 : vector<2x8x8xf32>
    %156 = arith.mulf %155, %145 : vector<2x8x8xf32>
    %c4_54 = arith.constant 4 : index
    %c1_55 = arith.constant 1 : index
    %157 = memref.load %arg4[%c4_54, %c1_55] : memref<6x4xf32, #tpu.memory_space<smem>>
    %158 = vector.broadcast %157 : f32 to vector<2x8x8xf32>
    %159 = arith.mulf %156, %158 : vector<2x8x8xf32>
    %c5_56 = arith.constant 5 : index
    %c1_57 = arith.constant 1 : index
    %160 = memref.load %arg4[%c5_56, %c1_57] : memref<6x4xf32, #tpu.memory_space<smem>>
    %161 = vector.broadcast %160 : f32 to vector<2x8x8xf32>
    %162 = arith.addf %159, %161 : vector<2x8x8xf32>
    "tpu.trace_start"() <{level = 10 : i32, message = "bij,bjd->bid"}> : () -> ()
    %cst_58 = arith.constant dense<0.000000e+00> : vector<2x8x16xf32>
    %163 = tpu.matmul %162, %21, %cst_58 {dimension_numbers = #tpu.dot_dimension_numbers<[2], [1], [1], [2], [0, 0, 0, 1, 1, 2], [0], [0]>, precision = #tpu.contract_precision<fp32>} : vector<2x8x8xf32>, vector<2x8x16xf32>, vector<2x8x16xf32> -> vector<2x8x16xf32>
    "tpu.trace_stop"() : () -> ()
    %164 = arith.subf %108, %128 : vector<2x8x8xf32>
    %165 = arith.mulf %164, %145 : vector<2x8x8xf32>
    %c4_59 = arith.constant 4 : index
    %c2_60 = arith.constant 2 : index
    %166 = memref.load %arg4[%c4_59, %c2_60] : memref<6x4xf32, #tpu.memory_space<smem>>
    %167 = vector.broadcast %166 : f32 to vector<2x8x8xf32>
    %168 = arith.mulf %165, %167 : vector<2x8x8xf32>
    %c5_61 = arith.constant 5 : index
    %c2_62 = arith.constant 2 : index
    %169 = memref.load %arg4[%c5_61, %c2_62] : memref<6x4xf32, #tpu.memory_space<smem>>
    %170 = vector.broadcast %169 : f32 to vector<2x8x8xf32>
    %171 = arith.addf %168, %170 : vector<2x8x8xf32>
    "tpu.trace_start"() <{level = 10 : i32, message = "bij,bjd->bid"}> : () -> ()
    %cst_63 = arith.constant dense<0.000000e+00> : vector<2x8x16xf32>
    %172 = tpu.matmul %171, %36, %cst_63 {dimension_numbers = #tpu.dot_dimension_numbers<[2], [1], [1], [2], [0, 0, 0, 1, 1, 2], [0], [0]>, precision = #tpu.contract_precision<fp32>} : vector<2x8x8xf32>, vector<2x8x16xf32>, vector<2x8x16xf32> -> vector<2x8x16xf32>
    "tpu.trace_stop"() : () -> ()
    %173 = arith.subf %123, %128 : vector<2x8x8xf32>
    %174 = arith.mulf %173, %145 : vector<2x8x8xf32>
    %c4_64 = arith.constant 4 : index
    %c3_65 = arith.constant 3 : index
    %175 = memref.load %arg4[%c4_64, %c3_65] : memref<6x4xf32, #tpu.memory_space<smem>>
    %176 = vector.broadcast %175 : f32 to vector<2x8x8xf32>
    %177 = arith.mulf %174, %176 : vector<2x8x8xf32>
    %c5_66 = arith.constant 5 : index
    %c3_67 = arith.constant 3 : index
    %178 = memref.load %arg4[%c5_66, %c3_67] : memref<6x4xf32, #tpu.memory_space<smem>>
    %179 = vector.broadcast %178 : f32 to vector<2x8x8xf32>
    %180 = arith.addf %177, %179 : vector<2x8x8xf32>
    "tpu.trace_start"() <{level = 10 : i32, message = "bij,bjd->bid"}> : () -> ()
    %cst_68 = arith.constant dense<0.000000e+00> : vector<2x8x16xf32>
    %181 = tpu.matmul %180, %51, %cst_68 {dimension_numbers = #tpu.dot_dimension_numbers<[2], [1], [1], [2], [0, 0, 0, 1, 1, 2], [0], [0]>, precision = #tpu.contract_precision<fp32>} : vector<2x8x8xf32>, vector<2x8x16xf32>, vector<2x8x16xf32> -> vector<2x8x16xf32>
    "tpu.trace_stop"() : () -> ()
    %182 = tpu.concatenate %154, %163, %172, %181 in 2 : vector<2x8x16xf32>, vector<2x8x16xf32>, vector<2x8x16xf32>, vector<2x8x16xf32> -> vector<2x8x64xf32>
    %183 = vector.shape_cast %182 : vector<2x8x64xf32> to vector<16x64xf32>
    %c0_69 = arith.constant 0 : index
    %c0_70 = arith.constant 0 : index
    %184 = vector.load %arg3[%c0_69, %c0_70] : memref<72x32xf32, #tpu.memory_space<vmem>>, vector<64x32xf32>
    %c64 = arith.constant 64 : index
    %c0_71 = arith.constant 0 : index
    %185 = vector.load %arg3[%c64, %c0_71] : memref<72x32xf32, #tpu.memory_space<vmem>>, vector<1x32xf32>
    %cst_72 = arith.constant dense<0.000000e+00> : vector<16x32xf32>
    %186 = tpu.matmul %183, %184, %cst_72 {dimension_numbers = #tpu.dot_dimension_numbers<[1], [0], [0], [1], [0, 0, 1, 1], [], []>, precision = #tpu.contract_precision<fp32>} : vector<16x64xf32>, vector<64x32xf32>, vector<16x32xf32> -> vector<16x32xf32>
    %187 = vector.broadcast %185 : vector<1x32xf32> to vector<16x32xf32>
    %188 = arith.addf %186, %187 : vector<16x32xf32>
    %c0_73 = arith.constant 0 : index
    %c0_74 = arith.constant 0 : index
    %189 = vector.load %arg5[%c0_73, %c0_74] : memref<16x32xf32, #tpu.memory_space<vmem>>, vector<16x32xf32>
    tpu.vector_store %arg5[%c0_73, %c0_74], %188 {strides = array<i32>} : memref<16x32xf32, #tpu.memory_space<vmem>>, vector<16x32xf32>,
    return
  }
  func.func @transform_0(%arg0: i32) -> (i32, i32) {
    %c0_i32 = arith.constant 0 : i32
    %c0_i32_0 = arith.constant 0 : i32
    return %arg0, %c0_i32 : i32, i32
  }
  func.func @transform_1(%arg0: i32) -> (i32, i32) {
    %c0_i32 = arith.constant 0 : i32
    %c0_i32_0 = arith.constant 0 : i32
    %c0_i32_1 = arith.constant 0 : i32
    return %c0_i32, %c0_i32_0 : i32, i32
  }
  func.func @transform_2(%arg0: i32) -> (i32, i32) {
    %c0_i32 = arith.constant 0 : i32
    %c0_i32_0 = arith.constant 0 : i32
    %c0_i32_1 = arith.constant 0 : i32
    return %c0_i32, %c0_i32_0 : i32, i32
  }
  func.func @transform_3(%arg0: i32) -> (i32, i32) {
    %c0_i32 = arith.constant 0 : i32
    %c0_i32_0 = arith.constant 0 : i32
    %c0_i32_1 = arith.constant 0 : i32
    return %c0_i32, %c0_i32_0 : i32, i32
  }
  func.func @transform_4(%arg0: i32) -> (i32, i32) {
    %c0_i32 = arith.constant 0 : i32
    %c0_i32_0 = arith.constant 0 : i32
    return %arg0, %c0_i32 : i32, i32
  }
}

</mosaic_0001>

<bundles_post_ra>
// kernel: tpu_custom_call.1
= control target key start
LH: loop header
LB: loop body
LE: loop exit
PB: predicated region body
PF: predicated region fallthrough
CT: control target
= control target key end

     0   :  { %9 = vsyncpa [#allocation4], 0  ;;  %s11141_s0 = inlined_call_operand.vmem [shape: f32[16,32], index: 0, kind: input, shape index: {}]   ;;  %s11142_s1 = inlined_call_operand.vmem [shape: f32[32,192], index: 1, kind: input, shape index: {}]   ;;  %s11143_s2 = inlined_call_operand.vmem [shape: f32[72,32], index: 2, kind: input, shape index: {}]   ;;  %s11144_s3 = inlined_call_operand.vmem [shape: f32[6,4], index: 3, kind: input, shape index: {}]   ;;  %s11145_s4 = inlined_call_operand.hbm [shape: f32[16,32], index: 4, kind: output, shape index: {}]  }
   0x1   :  { %10 = vsyncpa [#allocation3], 0  ;;  %s23_s17 = sshll.u32 %s11144_s3, 4  ;;  %s24_s17 = int_to_ptr.vmem [resolvable:$true] %s23_s17 }
   0x2   :  { %s10049_s18 = scalar_lea.vmem %s24_s17, 128  ;;  %p10054_p1 = scmp.lt.s32.totalorder %s24_s17, %s24_s17 }
   0x3   :  { %p10050_p0 = scmp.ne.s32.totalorder %s24_s17, %s10049_s18  ;;  %p10055_p2 = scmp.lt.s32.totalorder %s10049_s18, %s10049_s18 }
   0x5   :  { %p10056_p3 = por %p10055_p2, %p10054_p1 }
   0x7   :  { %p10057_p4 = pnand %p10056_p3, %p10050_p0 }
   0x9   :  { %10060 = shalt.err (!%p10057_p4)
}
   0xa   :  { %s10087_s19 = smov [#allocation2]  }
   0xb   :  { %26 = dma.vmem_to_smem %s24_s17, 128, %s10087_s19, [#allocation4]  }
   0xc   :  { %10083 = dma.done.wait [#allocation4], 128  }
   0xd   :  { %10084 = vsyncadd [#allocation4], 4294967168 }
   0xe   :  { %30 = sfence }
   0xf   :  { %v34_v0 = vld [vmem:[%s11142_s1 + $0x8] sm:$0xff]  ;;  %v36_v1 = vld [vmem:[%s11142_s1 + $0x18] sm:$0xff]  ;;  %v33_v2 = vld [vmem:[%s11142_s1] sm:$0xff]  ;;  %vm41_vm0 = vcmask 261120   ;;  %v10088_v9 = vmov 0.0   ;;  %vm10089_vm1 = vmmov 0  }
  0x10   :  { %v48_v3 = vand.u32 4294901760, %v34_v0  ;;  %v52_v4 = vand.u32 4294901760, %v36_v1  ;;  %v35_v5 = vld [vmem:[%s11142_s1 + $0x10] sm:$0xff]  ;;  %v50_v6 = vand.u32 4294901760, %v33_v2  ;;  %v38_v7 = vld [vmem:[%s11142_s1 + $0x28] sm:$0xff]  ;;  %v40_v8 = vld [vmem:[%s11142_s1 + $0x38] sm:$0xff]  ;;  %120 = vmatprep.mubr.f32.mxu0 %v10088_v9  ;;  %9070 = vmatprep.subr.mxu1 %v10088_v9 }
  0x11   :  { %v54_v10 = vand.u32 4294901760, %v35_v5  ;;  %v56_v11 = vand.u32 4294901760, %v38_v7  ;;  %v60_v12 = vand.u32 4294901760, %v40_v8  ;;  %v37_v13 = vld [vmem:[%s11142_s1 + $0x20] sm:$0xff]  ;;  %v39_v14 = vld [vmem:[%s11142_s1 + $0x30] sm:$0xff]  ;;  %v32_v32 = vld [vmem:[%s11141_s0 + $0x8] sm:$0xff]  ;;  %9072 = vmatprep.mubr.msk.f32.mxu1 %vm10089_vm1, %v10088_v9 }
  0x12   :  { %v31_v15 = vld [vmem:[%s11141_s0] sm:$0xff]  ;;  %v10157_v16 = vpack.c.bf16 %v52_v4, %v48_v3  ;;  %v10159_v17 = vsub.f32 %v34_v0, %v48_v3  ;;  %v10161_v18 = vsub.f32 %v36_v1, %v52_v4  ;;  %v10163_v19 = vsub.f32 %v33_v2, %v50_v6  ;;  %s10090_s0 = smov 112   ;;  %s10091_s12 = smov 64  }
  0x13   :  { %v10165_v20 = vpack.c.bf16 %v54_v10, %v50_v6  ;;  %v10167_v21 = vsub.f32 %v35_v5, %v54_v10  ;;  %v10169_v22 = vpack.c.bf16 %v60_v12, %v56_v11  ;;  %v10171_v23 = vsub.f32 %v38_v7, %v56_v11  ;;  %s10092_s13 = smov 48   ;;  %s10093_s14 = smov 96  }
  0x14   :  { %9665 = vmatprep.subr.bf16.mxu0 %v10157_v16  ;;  %v10174_v24 = vsub.f32 %v40_v8, %v60_v12  ;;  %v58_v25 = vand.u32 4294901760, %v37_v13  ;;  %v62_v26 = vand.u32 4294901760, %v39_v14  ;;  %v43_v27 = vsel %vm41_vm0, %v31_v15, 0  ;;  %s10094_s15 = smov 32   ;;  %s10095_s16 = smov 80  }
  0x15   :  { %9667 = vmatpush1.bf16.msra.mxu0 %v10165_v20  ;;  %v10178_v28 = vand.u32 4294901760, %v43_v27  ;;  %v145_v29 = vand.u32 4294901760, %v10159_v17  ;;  %v157_v30 = vand.u32 4294901760, %v10161_v18  ;;  %v151_v31 = vand.u32 4294901760, %v10163_v19  ;;  %s10096_s17 = smov 16   ;;  %s10615_s18 = sld [smem:[#allocation2]] }
  0x16   :  { %9669 = vmatprep.subr.bf16.mxu0 %v10169_v22  ;;  %v10187_v33 = vpack.c.bf16 %v62_v26, %v58_v25  ;;  %v10189_v34 = vsub.f32 %v37_v13, %v58_v25  ;;  %v10191_v35 = vsub.f32 %v39_v14, %v62_v26  ;;  %v163_v36 = vand.u32 4294901760, %v10167_v21  ;;  %s10617_s19 = sld [smem:[#allocation2 + $0x1]]  ;;  %s10619_s20 = sld [smem:[#allocation2 + $0x2]] }
  0x17   :  { %v10195_v37 = vsub.f32 %v43_v27, %v10178_v28  ;;  %v146_v38 = vsub.f32 %v10159_v17, %v145_v29  ;;  %v158_v39 = vsub.f32 %v10161_v18, %v157_v30  ;;  %v152_v40 = vsub.f32 %v10163_v19, %v151_v31  ;;  %s10621_s21 = sld [smem:[#allocation2 + $0x3]]  ;;  %s10641_s22 = sld [smem:[#allocation2 + $0x80]] }
  0x18   :  { %v164_v41 = vsub.f32 %v10167_v21, %v163_v36  ;;  %v46_v42 = vsel %vm41_vm0, %v32_v32, 0  ;;  %v169_v43 = vand.u32 4294901760, %v10171_v23  ;;  %v181_v44 = vand.u32 4294901760, %v10174_v24  ;;  %s10643_s23 = sld [smem:[#allocation2 + $0x81]]  ;;  %s10645_s3 = sld [smem:[#allocation2 + $0x82]] }
  0x19   :  { %9671 = vmatpush1.bf16.msra.mxu0 %v10187_v33  ;;  %v123_v45 = vand.u32 4294901760, %v10195_v37  ;;  %v147_v46 = vand.u32 4294901760, %v146_v38  ;;  %v159_v47 = vand.u32 4294901760, %v158_v39  ;;  %v153_v48 = vand.u32 4294901760, %v152_v40  ;;  %s10647_s24 = sld [smem:[#allocation2 + $0x83]]  ;;  %s10649_s25 = sld [smem:[#allocation2 + $0x100]] }
  0x1a   :  { %v165_v49 = vand.u32 4294901760, %v164_v41  ;;  %v10214_v50 = vand.u32 4294901760, %v46_v42  ;;  %v170_v51 = vsub.f32 %v10171_v23, %v169_v43  ;;  %v182_v52 = vsub.f32 %v10174_v24, %v181_v44  ;;  %s10651_s26 = sld [smem:[#allocation2 + $0x101]]  ;;  %s10653_s27 = sld [smem:[#allocation2 + $0x102]] }
  0x1b   :  { %v124_v53 = vsub.f32 %v10195_v37, %v123_v45  ;;  %v9672_v54 = vpack.c.bf16 %v159_v47, %v147_v46  ;;  %v175_v55 = vand.u32 4294901760, %v10189_v34  ;;  %v187_v56 = vand.u32 4294901760, %v10191_v35  ;;  %s10655_s28 = sld [smem:[#allocation2 + $0x103]]  ;;  %s10659_s29 = sld [smem:[#allocation2 + $0x180]] }
  0x1c   :  { %v9674_v57 = vpack.c.bf16 %v165_v49, %v153_v48  ;;  %v133_v58 = vsub.f32 %v46_v42, %v10214_v50  ;;  %v171_v59 = vand.u32 4294901760, %v170_v51  ;;  %v183_v60 = vand.u32 4294901760, %v182_v52  ;;  %s10661_s30 = sld [smem:[#allocation2 + $0x181]]  ;;  %s10667_s5 = sld [smem:[#allocation2 + $0x182]] }
  0x1d   :  { %v125_v61 = vand.u32 4294901760, %v124_v53  ;;  %9673 = vmatprep.subr.bf16.mxu0 %v9672_v54  ;;  %v176_v62 = vsub.f32 %v10189_v34, %v175_v55  ;;  %v188_v63 = vsub.f32 %v10191_v35, %v187_v56  ;;  %v9680_v7 = vpack.c.bf16 %v10161_v18, %v10159_v17  ;;  %s10669_s6 = sld [smem:[#allocation2 + $0x183]]  ;;  %s10702_s7 = sld [smem:[#allocation2 + $0x200]] }
  0x1e   :  { %v134_v0 = vand.u32 4294901760, %v133_v58  ;;  %v9676_v1 = vpack.c.bf16 %v183_v60, %v171_v59  ;;  %v9682_v8 = vpack.c.bf16 %v10167_v21, %v10163_v19  ;;  %v9684_v10 = vpack.c.bf16 %v10174_v24, %v10171_v23  ;;  %s10704_s8 = sld [smem:[#allocation2 + $0x280]]  ;;  %s10732_s9 = sld [smem:[#allocation2 + $0x201]] }
  0x1f   :  { %126 = vmatmul.mubr.f32.vlgmr.msra.gmra.mrb[0].mxu0 %v125_v61  ;;  %v177_v2 = vand.u32 4294901760, %v176_v62  ;;  %v189_v3 = vand.u32 4294901760, %v188_v63  ;;  %v9686_v11 = vpack.c.bf16 %v10191_v35, %v10189_v34  ;;  %v9696_v12 = vpack.c.bf16 %v157_v30, %v145_v29  ;;  %s10735_s10 = sld [smem:[#allocation2 + $0x281]]  ;;  %s10790_s1 = sld [smem:[#allocation2 + $0x202]] }
  0x20   :  { %9675 = vmatpush1.bf16.msra.mxu0 %v9674_v57  ;;  %131 = vmatprep.mubr.f32.mxu0 %v10088_v9  ;;  %v135_v4 = vsub.f32 %v133_v58, %v134_v0  ;;  %v9698_v13 = vpack.c.bf16 %v163_v36, %v151_v31  ;;  %v9700_v14 = vpack.c.bf16 %v181_v44, %v169_v43  ;;  %vm643_vm2 = vcmask 130048   ;;  %s10793_s11 = sld [smem:[#allocation2 + $0x282]] }
  0x21   :  { %9677 = vmatprep.subr.bf16.mxu0 %v9676_v1  ;;  %v9678_v5 = vpack.c.bf16 %v189_v3, %v177_v2  ;;  %v9702_v15 = vpack.c.bf16 %v187_v56, %v175_v55  ;;  %vm1549_vm3 = vcmask 64512   ;;  %vm8172_vm4 = vcmask 392192  }
  0x22   :  { %v136_v6 = vand.u32 4294901760, %v135_v4  ;;  %vm8188_vm5 = vcmask 523264  }
  0x24   :  { %137 = vmatmul.mubr.f32.gmra.mrb[2].mxu0 %v136_v6 }
  0x25   :  { %9679 = vmatpush1.bf16.msra.mxu0 %v9678_v5  ;;  %247 = vmatprep.mubr.f32.mxu0 %v10088_v9 }
  0x26   :  { %9681 = vmatprep.subr.bf16.mxu0 %v9680_v7 }
  0x28   :  { %249 = vmatmul.mubr.f32.vlgmr.msra.gmra.mrb[0].mxu0 %v10178_v28 }
  0x29   :  { %9683 = vmatpush1.bf16.msra.mxu0 %v9682_v8  ;;  %254 = vmatprep.mubr.f32.mxu0 %v10088_v9 }
  0x2a   :  { %9685 = vmatprep.subr.bf16.mxu0 %v9684_v10 }
  0x2c   :  { %256 = vmatmul.mubr.f32.gmra.mrb[2].mxu0 %v10214_v50 }
  0x2d   :  { %9687 = vmatpush1.bf16.msra.mxu0 %v9686_v11  ;;  %342 = vmatprep.mubr.f32.mxu0 %v10088_v9 }
  0x2e   :  { %9689 = vmatprep.subr.bf16.mxu0 %v10157_v16 }
  0x30   :  { %345 = vmatmul.mubr.f32.vlgmr.msra.gmra.mrb[0].mxu0 %v10195_v37 }
  0x31   :  { %9691 = vmatpush1.bf16.msra.mxu0 %v10165_v20  ;;  %350 = vmatprep.mubr.f32.mxu0 %v10088_v9 }
  0x32   :  { %9693 = vmatprep.subr.bf16.mxu0 %v10169_v22 }
  0x34   :  { %353 = vmatmul.mubr.f32.gmra.mrb[2].mxu0 %v133_v58 }
  0x35   :  { %9695 = vmatpush1.bf16.msra.mxu0 %v10187_v33  ;;  %431 = vmatprep.mubr.f32.mxu0 %v10088_v9 }
  0x36   :  { %9697 = vmatprep.subr.bf16.mxu0 %v9696_v12 }
  0x38   :  { %435 = vmatmul.mubr.f32.vlgmr.msra.gmra.mrb[0].mxu0 %v123_v45 }
  0x39   :  { %9699 = vmatpush1.bf16.msra.mxu0 %v9698_v13  ;;  %440 = vmatprep.mubr.f32.mxu0 %v10088_v9 }
  0x3a   :  { %9701 = vmatprep.subr.bf16.mxu0 %v9700_v14 }
  0x3c   :  { %444 = vmatmul.mubr.f32.gmra.mrb[2].mxu0 %v134_v0 }
  0x3d   :  { %9703 = vmatpush1.bf16.msra.mxu0 %v9702_v15  ;;  %538 = vmatprep.mubr.f32.mxu0 %v10088_v9 }
  0x3e   :  { %9705 = vmatprep.subr.bf16.mxu0 %v10157_v16 }
  0x40   :  { %540 = vmatmul.mubr.f32.vlgmr.msra.gmra.mrb[0].mxu0 %v10178_v28 }
  0x41   :  { %9707 = vmatpush1.bf16.msra.mxu0 %v10165_v20  ;;  %545 = vmatprep.mubr.f32.mxu0 %v10088_v9 }
  0x42   :  { %9709 = vmatprep.subr.bf16.mxu0 %v10169_v22 }
  0x44   :  { %547 = vmatmul.mubr.f32.gmra.mrb[2].mxu0 %v10214_v50 }
  0x45   :  { %9711 = vmatpush1.bf16.msra.mxu0 %v10187_v33  ;;  %625 = vmatprep.mubr.f32.mxu0 %v10088_v9 }
  0x46   :  { %9160 = vmatprep.subr.mxu0 %v10088_v9 }
  0x48   :  { %627 = vmatmul.mubr.f32.vlgmr.msra.gmra.mrb[0].mxu0 %v10178_v28 }
  0x49   :  { %632 = vmatprep.mubr.f32.mxu0 %v10088_v9 }
  0x4c   :  { %634 = vmatmul.mubr.f32.gmra.mrb[2].mxu0 %v10214_v50 }
  0x4d   :  { %9162 = vmatprep.mubr.msk.f32.mxu0 %vm10089_vm1, %v10088_v9 }
 0x11b   :  { %v628_v16 = vpop.f32.mrb[0].mxu0 }
 0x11c   :  { %1572 = vrot.lane.b32.xlu1 %v628_v16, %s10090_s0  ;;  %641 = vrot.lane.b32.xlu0 %v628_v16, %s10091_s12  ;;  %v10272_v17 = vpop.f32.mrb[1].mxu0  ;;  %v644_v20 = vsel %vm643_vm2, %v628_v16, 0 }
 0x11d   :  { %v10297_v21 = vand.u32 4294901760, %v644_v20 }
 0x11f   :  { %v10274_v18 = vpop.f32.mrb[2].mxu0  ;;  %v715_v22 = vsub.f32 %v644_v20, %v10297_v21 }
 0x120   :  { %2026 = vrot.lane.b32.xlu1 %v10274_v18, %s10090_s0  ;;  %1095 = vrot.lane.b32.xlu0 %v10274_v18, %s10091_s12  ;;  %v10279_v19 = vpop.f32.mrb[3].mxu0  ;;  %v1097_v49 = vsel %vm643_vm2, %v10274_v18, 0  ;;  %s10873_s12 = sld [smem:[#allocation2 + $0x283]] }
 0x121   :  { %v716_v23 = vand.u32 4294901760, %v715_v22  ;;  %v10342_v52 = vand.u32 4294901760, %v1097_v49 }
 0x123   :  { %v717_v27 = vsub.f32 %v715_v22, %v716_v23  ;;  %v10351_v55 = vsub.f32 %v1097_v49, %v10342_v52 }
 0x124   :  { %2028 = vrot.lane.b32.xlu1 %v10274_v18, %s10092_s13  ;;  %1574 = vrot.lane.b32.xlu0 %v628_v16, %s10092_s13 }
 0x125   :  { %v718_v32 = vand.u32 4294901760, %v717_v27  ;;  %v1169_v59 = vand.u32 4294901760, %v10351_v55 }
 0x127   :  { %v1170_v63 = vsub.f32 %v10351_v55, %v1169_v59 }
 0x128   :  { %2958 = vrot.lane.b32.xlu1 %v10274_v18, %s10093_s14  ;;  %2504 = vrot.lane.b32.xlu0 %v628_v16, %s10093_s14 }
 0x129   :  { %v1171_v3 = vand.u32 4294901760, %v1170_v63 }
 0x12c   :  { %2960 = vrot.lane.b32.xlu1 %v10274_v18, %s10094_s15  ;;  %2506 = vrot.lane.b32.xlu0 %v628_v16, %s10094_s15 }
 0x130   :  { %3890 = vrot.lane.b32.xlu1 %v10274_v18, %s10095_s16  ;;  %3436 = vrot.lane.b32.xlu0 %v628_v16, %s10095_s16 }
 0x134   :  { %3892 = vrot.lane.b32.xlu1 %v10274_v18, %s10096_s17  ;;  %3438 = vrot.lane.b32.xlu0 %v628_v16, %s10096_s17 }
 0x18e   :  { %v10300_v24 = vpop.permute.xlu1 %1572  ;;  %v642_v25 = vpop.permute.xlu0 %641 }
 0x18f   :  { %v646_v26 = vsel %vm643_vm2, %v642_v25, 0  ;;  %v1576_v13 = vsel %vm643_vm2, %v10300_v24, 0 }
 0x190   :  { %v10303_v28 = vand.u32 4294901760, %v646_v26  ;;  %v10424_v16 = vand.u32 4294901760, %v1576_v13 }
 0x192   :  { %v726_v29 = vsub.f32 %v646_v26, %v10303_v28  ;;  %9071 = vmatpush3.xpose.msra.mxu1 %v10303_v28  ;;  %v2027_v30 = vpop.permute.xlu1 %2026  ;;  %v1096_v48 = vpop.permute.xlu0 %1095  ;;  %v10436_v20 = vsub.f32 %v1576_v13, %v10424_v16 }
 0x193   :  { %v2030_v31 = vsel %vm643_vm2, %v2027_v30, 0  ;;  %9075 = vmatprep.subr.mxu1 %v10088_v9  ;;  %v1099_v50 = vsel %vm643_vm2, %v1096_v48, 0 }
 0x194   :  { %v727_v33 = vand.u32 4294901760, %v726_v29  ;;  %v10309_v34 = vand.u32 4294901760, %v2030_v31  ;;  %v10344_v53 = vand.u32 4294901760, %v1099_v50  ;;  %v1648_v25 = vand.u32 4294901760, %v10436_v20 }
 0x195   :  { %9073 = vmatmul.mubr.f32.vlgmr.msra.gmra.mrb[0].mxu1 %v718_v32 }
 0x196   :  { %v728_v35 = vsub.f32 %v726_v29, %v727_v33  ;;  %v2101_v36 = vsub.f32 %v2030_v31, %v10309_v34  ;;  %v2029_v37 = vpop.permute.xlu1 %2028  ;;  %9077 = vmatprep.mubr.msk.f32.mxu1 %vm10089_vm1, %v10088_v9  ;;  %v10354_v56 = vsub.f32 %v1099_v50, %v10344_v53  ;;  %v1575_v12 = vpop.permute.xlu0 %1574 }
 0x197   :  { %v2032_v38 = vsel %vm643_vm2, %v2029_v37, 0  ;;  %v1578_v14 = vsel %vm643_vm2, %v1575_v12, 0 }
 0x198   :  { %v729_v39 = vand.u32 4294901760, %v728_v35  ;;  %v2102_v40 = vand.u32 4294901760, %v2101_v36  ;;  %v10315_v41 = vand.u32 4294901760, %v2032_v38  ;;  %v1180_v60 = vand.u32 4294901760, %v10354_v56 }
 0x199   :  { %v10429_v18 = vand.u32 4294901760, %v1578_v14 }
 0x19a   :  { %v2103_v42 = vsub.f32 %v2101_v36, %v2102_v40  ;;  %9076 = vmatpush3.xpose.msra.mxu1 %v729_v39  ;;  %v2112_v43 = vsub.f32 %v2032_v38, %v10315_v41  ;;  %9161 = vmatpush3.xpose.msra.mxu0 %v10315_v41  ;;  %v2959_v51 = vpop.permute.xlu1 %2958  ;;  %v1181_v0 = vsub.f32 %v10354_v56, %v1180_v60 }
 0x19b   :  { %9080 = vmatprep.subr.mxu1 %v10088_v9  ;;  %9165 = vmatprep.subr.mxu0 %v10088_v9  ;;  %v2962_v57 = vsel %vm643_vm2, %v2959_v51, 0 }
 0x19c   :  { %v2104_v44 = vand.u32 4294901760, %v2103_v42  ;;  %v2113_v45 = vand.u32 4294901760, %v2112_v43  ;;  %v10364_v61 = vand.u32 4294901760, %v2962_v57  ;;  %v1182_v4 = vand.u32 4294901760, %v1181_v0 }
 0x19d   :  { %9078 = vmatmul.mubr.f32.vlgmr.msra.gmra.mrb[0].mxu1 %v10297_v21 }
 0x19e   :  { %9081 = vmatpush3.xpose.msra.mxu1 %v726_v29  ;;  %9163 = vmatmul.mubr.f32.vlgmr.msra.gmra.mrb[4].mxu0 %v2104_v44  ;;  %v2114_v46 = vsub.f32 %v2112_v43, %v2113_v45  ;;  %v2961_v54 = vpop.permute.xlu1 %2960  ;;  %v10375_v1 = vsub.f32 %v2962_v57, %v10364_v61  ;;  %v1649_v29 = vsub.f32 %v10436_v20, %v1648_v25 }
 0x19f   :  { %9082 = vmatprep.mubr.msk.f32.mxu1 %vm10089_vm1, %v10088_v9  ;;  %9085 = vmatprep.subr.mxu1 %v10088_v9  ;;  %v2964_v58 = vsel %vm643_vm2, %v2961_v54, 0 }
 0x1a0   :  { %9167 = vmatprep.mubr.msk.f32.mxu0 %vm10089_vm1, %v10088_v9  ;;  %v2115_v47 = vand.u32 4294901760, %v2114_v46  ;;  %v10369_v62 = vand.u32 4294901760, %v2964_v58  ;;  %v3034_v5 = vand.u32 4294901760, %v10375_v1 }
 0x1a2   :  { %9166 = vmatpush3.xpose.msra.mxu0 %v2115_v47  ;;  %v10378_v2 = vsub.f32 %v2964_v58, %v10369_v62  ;;  %v3035_v7 = vsub.f32 %v10375_v1, %v3034_v5  ;;  %v3891_v15 = vpop.permute.xlu1 %3890 }
 0x1a3   :  { %9170 = vmatprep.subr.mxu0 %v10088_v9 }
 0x1a4   :  { %v3045_v6 = vand.u32 4294901760, %v10378_v2  ;;  %v3036_v10 = vand.u32 4294901760, %v3035_v7 }
 0x1a5   :  { %9083 = vmatmul.mubr.f32.vlgmr.msra.gmra.mrb[0].mxu1 %v715_v22  ;;  %v10439_v22 = vsub.f32 %v1578_v14, %v10429_v18 }
 0x1a6   :  { %9086 = vmatpush3.xpose.msra.mxu1 %v10303_v28  ;;  %9168 = vmatmul.mubr.f32.vlgmr.msra.gmra.mrb[4].mxu0 %v10309_v34  ;;  %v3046_v8 = vsub.f32 %v10378_v2, %v3045_v6 }
 0x1a7   :  { %9171 = vmatpush3.xpose.msra.mxu0 %v2112_v43  ;;  %9087 = vmatprep.mubr.msk.f32.mxu1 %vm10089_vm1, %v10088_v9  ;;  %v1659_v26 = vand.u32 4294901760, %v10439_v22 }
 0x1a8   :  { %9090 = vmatprep.subr.mxu1 %v10088_v9  ;;  %9172 = vmatprep.mubr.msk.f32.mxu0 %vm10089_vm1, %v10088_v9  ;;  %v3047_v11 = vand.u32 4294901760, %v3046_v8 }
 0x1a9   :  { %9175 = vmatprep.subr.mxu0 %v10088_v9  ;;  %v1660_v30 = vsub.f32 %v10439_v22, %v1659_v26 }
 0x1ad   :  { %9088 = vmatmul.mubr.f32.vlgmr.msra.gmra.mrb[0].mxu1 %v716_v23  ;;  %v3894_v23 = vsel %vm643_vm2, %v3891_v15, 0 }
 0x1ae   :  { %9091 = vmatpush3.xpose.msra.mxu1 %v727_v33  ;;  %9173 = vmatmul.mubr.f32.vlgmr.msra.gmra.mrb[4].mxu0 %v2101_v36  ;;  %v10449_v27 = vand.u32 4294901760, %v3894_v23  ;;  %v1650_v33 = vand.u32 4294901760, %v1649_v29 }
 0x1af   :  { %9176 = vmatpush3.xpose.msra.mxu0 %v10315_v41  ;;  %9092 = vmatprep.mubr.msk.f32.mxu1 %vm10089_vm1, %v10088_v9 }
 0x1b0   :  { %9095 = vmatprep.subr.mxu1 %v10088_v9  ;;  %9177 = vmatprep.mubr.msk.f32.mxu0 %vm10089_vm1, %v10088_v9  ;;  %v3965_v31 = vsub.f32 %v3894_v23, %v10449_v27 }
 0x1b1   :  { %9180 = vmatprep.subr.mxu0 %v10088_v9 }
 0x1b2   :  { %v3966_v35 = vand.u32 4294901760, %v3965_v31 }
 0x1b4   :  { %v3967_v37 = vsub.f32 %v3965_v31, %v3966_v35 }
 0x1b5   :  { %9093 = vmatmul.mubr.f32.vlgmr.msra.gmra.mrb[0].mxu1 %v10297_v21 }
 0x1b6   :  { %9096 = vmatpush3.xpose.msra.mxu1 %v10303_v28  ;;  %9178 = vmatmul.mubr.f32.vlgmr.msra.gmra.mrb[4].mxu0 %v2102_v40  ;;  %v3968_v39 = vand.u32 4294901760, %v3967_v37 }
 0x1b7   :  { %9181 = vmatpush3.xpose.msra.mxu0 %v2113_v45  ;;  %9097 = vmatprep.mubr.msk.f32.mxu1 %vm10089_vm1, %v10088_v9 }
 0x1b8   :  { %9100 = vmatprep.subr.mxu1 %v10088_v9  ;;  %9182 = vmatprep.mubr.msk.f32.mxu0 %vm10089_vm1, %v10088_v9 }
 0x1b9   :  { %9185 = vmatprep.subr.mxu0 %v10088_v9 }
 0x1bd   :  { %9098 = vmatmul.mubr.f32.vlgmr.msra.gmra.mrb[0].mxu1 %v10297_v21  ;;  %v3893_v21 = vpop.permute.xlu1 %3892 }
 0x1be   :  { %9101 = vmatpush3.xpose.msra.mxu1 %v10344_v53  ;;  %9183 = vmatmul.mubr.f32.vlgmr.msra.gmra.mrb[4].mxu0 %v10309_v34  ;;  %v3896_v24 = vsel %vm643_vm2, %v3893_v21, 0 }
 0x1bf   :  { %9186 = vmatpush3.xpose.msra.mxu0 %v10315_v41  ;;  %9102 = vmatprep.mubr.msk.f32.mxu1 %vm10089_vm1, %v10088_v9  ;;  %v10454_v28 = vand.u32 4294901760, %v3896_v24  ;;  %v2505_v41 = vpop.permute.xlu0 %2504 }
 0x1c0   :  { %9105 = vmatprep.subr.mxu1 %v10088_v9  ;;  %9187 = vmatprep.mubr.msk.f32.mxu0 %vm10089_vm1, %v10088_v9  ;;  %v2508_v43 = vsel %vm643_vm2, %v2505_v41, 0 }
 0x1c1   :  { %9103 = vmatmul.mubr.f32.vlgmr.msra.gmra.mrb[2].mxu1 %v1171_v3  ;;  %9220 = vmatprep.subr.mxu0 %v10088_v9  ;;  %v3976_v32 = vsub.f32 %v3896_v24, %v10454_v28  ;;  %v10498_v45 = vand.u32 4294901760, %v2508_v43 }
 0x1c2   :  { %9106 = vmatpush3.xpose.msra.mxu1 %v1182_v4  ;;  %9107 = vmatprep.mubr.msk.f32.mxu1 %vm10089_vm1, %v10088_v9 }
 0x1c3   :  { %9110 = vmatprep.subr.mxu1 %v10088_v9  ;;  %v3977_v36 = vand.u32 4294901760, %v3976_v32  ;;  %v2507_v42 = vpop.permute.xlu0 %2506  ;;  %v2579_v47 = vsub.f32 %v2508_v43, %v10498_v45 }
 0x1c4   :  { %v2510_v44 = vsel %vm643_vm2, %v2507_v42, 0 }
 0x1c5   :  { %v3978_v38 = vsub.f32 %v3976_v32, %v3977_v36  ;;  %v2513_v46 = vand.u32 4294901760, %v2510_v44  ;;  %v2580_v49 = vand.u32 4294901760, %v2579_v47 }
 0x1c6   :  { %9188 = vmatmul.mubr.f32.vlgmr.msra.gmra.mrb[4].mxu0 %v10309_v34  ;;  %v1661_v34 = vand.u32 4294901760, %v1660_v30 }
 0x1c7   :  { %9221 = vmatpush3.xpose.msra.mxu0 %v10369_v62  ;;  %9222 = vmatprep.mubr.msk.f32.mxu0 %vm10089_vm1, %v10088_v9  ;;  %v3979_v40 = vand.u32 4294901760, %v3978_v38  ;;  %v2590_v48 = vsub.f32 %v2510_v44, %v2513_v46  ;;  %v2581_v51 = vsub.f32 %v2579_v47, %v2580_v49 }
 0x1c8   :  { %9225 = vmatprep.subr.mxu0 %v10088_v9 }
 0x1c9   :  { %9108 = vmatmul.mubr.f32.vlgmr.msra.gmra.mrb[2].mxu1 %v10342_v52  ;;  %v2591_v50 = vand.u32 4294901760, %v2590_v48 }
 0x1ca   :  { %9111 = vmatpush3.xpose.msra.mxu1 %v10354_v56  ;;  %9223 = vmatmul.mubr.f32.vlgmr.msra.gmra.mrb[6].mxu0 %v3036_v10  ;;  %v3437_v56 = vpop.permute.xlu0 %3436 }
 0x1cb   :  { %9226 = vmatpush3.xpose.msra.mxu0 %v3047_v11  ;;  %9112 = vmatprep.mubr.msk.f32.mxu1 %vm10089_vm1, %v10088_v9  ;;  %v3440_v58 = vsel %vm643_vm2, %v3437_v56, 0 }
 0x1cc   :  { %9115 = vmatprep.subr.mxu1 %v10088_v9  ;;  %9227 = vmatprep.mubr.msk.f32.mxu0 %vm10089_vm1, %v10088_v9 }
 0x1cd   :  { %9230 = vmatprep.subr.mxu0 %v10088_v9 }
 0x1ce   :  { %v3439_v57 = vpop.permute.xlu0 %3438 }
 0x1d1   :  { %9113 = vmatmul.mubr.f32.vlgmr.msra.gmra.mrb[2].mxu1 %v10351_v55  ;;  %v10529_v55 = vand.u32 4294901760, %v10279_v19 }
 0x1d2   :  { %9116 = vmatpush3.xpose.msra.mxu1 %v10344_v53  ;;  %9228 = vmatmul.mubr.f32.vlgmr.msra.gmra.mrb[6].mxu0 %v10364_v61 }
 0x1d3   :  { %9231 = vmatpush3.xpose.msra.mxu0 %v10378_v2  ;;  %9117 = vmatprep.mubr.msk.f32.mxu1 %vm10089_vm1, %v10088_v9 }
 0x1d4   :  { %9120 = vmatprep.subr.mxu1 %v10088_v9  ;;  %9232 = vmatprep.mubr.msk.f32.mxu0 %vm10089_vm1, %v10088_v9 }
 0x1d5   :  { %9235 = vmatprep.subr.mxu0 %v10088_v9 }
 0x1d9   :  { %9118 = vmatmul.mubr.f32.vlgmr.msra.gmra.mrb[2].mxu1 %v1169_v59  ;;  %v3442_v59 = vsel %vm643_vm2, %v3439_v57, 0 }
 0x1da   :  { %9121 = vmatpush3.xpose.msra.mxu1 %v1180_v60  ;;  %9233 = vmatmul.mubr.f32.vlgmr.msra.gmra.mrb[6].mxu0 %v10375_v1  ;;  %v3510_v60 = vand.u32 4294901760, %v3440_v58 }
 0x1db   :  { %9236 = vmatpush3.xpose.msra.mxu0 %v10369_v62  ;;  %9122 = vmatprep.mubr.msk.f32.mxu1 %vm10089_vm1, %v10088_v9 }
 0x1dc   :  { %9125 = vmatprep.subr.mxu1 %v10088_v9  ;;  %9237 = vmatprep.mubr.msk.f32.mxu0 %vm10089_vm1, %v10088_v9 }
 0x1dd   :  { %9240 = vmatprep.subr.mxu0 %v10088_v9 }
 0x1e1   :  { %9123 = vmatmul.mubr.f32.vlgmr.msra.gmra.mrb[2].mxu1 %v10342_v52 }
 0x1e2   :  { %9126 = vmatpush3.xpose.msra.mxu1 %v10344_v53  ;;  %9238 = vmatmul.mubr.f32.vlgmr.msra.gmra.mrb[6].mxu0 %v3034_v5  ;;  %v2582_v53 = vand.u32 4294901760, %v2581_v51 }
 0x1e3   :  { %9241 = vmatpush3.xpose.msra.mxu0 %v3045_v6  ;;  %9127 = vmatprep.mubr.msk.f32.mxu1 %vm10089_vm1, %v10088_v9  ;;  %v10572_v6 = vand.u32 4294901760, %v10272_v17 }
 0x1e4   :  { %9130 = vmatprep.subr.mxu1 %v10088_v9  ;;  %9242 = vmatprep.mubr.msk.f32.mxu0 %vm10089_vm1, %v10088_v9 }
 0x1e5   :  { %9245 = vmatprep.subr.mxu0 %v10088_v9 }
 0x1e9   :  { %9128 = vmatmul.mubr.f32.vlgmr.msra.gmra.mrb[2].mxu1 %v10342_v52  ;;  %v2592_v52 = vsub.f32 %v2590_v48, %v2591_v50 }
 0x1ea   :  { %9131 = vmatpush3.xpose.msra.mxu1 %v10429_v18  ;;  %9243 = vmatmul.mubr.f32.vlgmr.msra.gmra.mrb[6].mxu0 %v10364_v61 }
 0x1eb   :  { %9246 = vmatpush3.xpose.msra.mxu0 %v10369_v62  ;;  %9132 = vmatprep.mubr.msk.f32.mxu1 %vm10089_vm1, %v10088_v9  ;;  %v2593_v54 = vand.u32 4294901760, %v2592_v52  ;;  %v3511_v62 = vsub.f32 %v3440_v58, %v3510_v60 }
 0x1ec   :  { %9135 = vmatprep.subr.mxu1 %v10088_v9  ;;  %9247 = vmatprep.mubr.msk.f32.mxu0 %vm10089_vm1, %v10088_v9 }
 0x1ed   :  { %9133 = vmatmul.mubr.f32.vlgmr.msra.gmra.mrb[4].mxu1 %v1650_v33  ;;  %9280 = vmatprep.subr.mxu0 %v10088_v9  ;;  %v3512_v0 = vand.u32 4294901760, %v3511_v62 }
 0x1ee   :  { %9136 = vmatpush3.xpose.msra.mxu1 %v1661_v34  ;;  %9137 = vmatprep.mubr.msk.f32.mxu1 %vm10089_vm1, %v10088_v9 }
 0x1ef   :  { %9140 = vmatprep.subr.mxu1 %v10088_v9  ;;  %v3513_v2 = vsub.f32 %v3511_v62, %v3512_v0 }
 0x1f1   :  { %v3514_v4 = vand.u32 4294901760, %v3513_v2 }
 0x1f2   :  { %9248 = vmatmul.mubr.f32.vlgmr.msra.gmra.mrb[6].mxu0 %v10364_v61  ;;  %v3445_v61 = vand.u32 4294901760, %v3442_v59 }
 0x1f3   :  { %9281 = vmatpush3.xpose.msra.mxu0 %v10454_v28  ;;  %9282 = vmatprep.mubr.msk.f32.mxu0 %vm10089_vm1, %v10088_v9 }
 0x1f4   :  { %9285 = vmatprep.subr.mxu0 %v10088_v9  ;;  %v3522_v63 = vsub.f32 %v3442_v59, %v3445_v61 }
 0x1f5   :  { %9138 = vmatmul.mubr.f32.vlgmr.msra.gmra.mrb[4].mxu1 %v10424_v16 }
 0x1f6   :  { %9141 = vmatpush3.xpose.msra.mxu1 %v10439_v22  ;;  %9283 = vmatmul.mubr.f32.vlgmr.msra.gmra.mrb[8].mxu0 %v3968_v39  ;;  %v3523_v1 = vand.u32 4294901760, %v3522_v63 }
 0x1f7   :  { %9286 = vmatpush3.xpose.msra.mxu0 %v3979_v40  ;;  %9142 = vmatprep.mubr.msk.f32.mxu1 %vm10089_vm1, %v10088_v9 }
 0x1f8   :  { %9145 = vmatprep.subr.mxu1 %v10088_v9  ;;  %9287 = vmatprep.mubr.msk.f32.mxu0 %vm10089_vm1, %v10088_v9  ;;  %v3524_v3 = vsub.f32 %v3522_v63, %v3523_v1 }
 0x1f9   :  { %9290 = vmatprep.subr.mxu0 %v10088_v9 }
 0x1fa   :  { %v3525_v5 = vand.u32 4294901760, %v3524_v3 }
 0x1fd   :  { %9143 = vmatmul.mubr.f32.vlgmr.msra.gmra.mrb[4].mxu1 %v10436_v20 }
 0x1fe   :  { %9146 = vmatpush3.xpose.msra.mxu1 %v10429_v18  ;;  %9288 = vmatmul.mubr.f32.vlgmr.msra.gmra.mrb[8].mxu0 %v10449_v27 }
 0x1ff   :  { %9291 = vmatpush3.xpose.msra.mxu0 %v3976_v32  ;;  %9147 = vmatprep.mubr.msk.f32.mxu1 %vm10089_vm1, %v10088_v9 }
 0x200   :  { %9150 = vmatprep.subr.mxu1 %v10088_v9  ;;  %9292 = vmatprep.mubr.msk.f32.mxu0 %vm10089_vm1, %v10088_v9 }
 0x201   :  { %9295 = vmatprep.subr.mxu0 %v10088_v9 }
 0x205   :  { %9148 = vmatmul.mubr.f32.vlgmr.msra.gmra.mrb[4].mxu1 %v1648_v25 }
 0x206   :  { %9151 = vmatpush3.xpose.msra.mxu1 %v1659_v26  ;;  %9293 = vmatmul.mubr.f32.vlgmr.msra.gmra.mrb[8].mxu0 %v3965_v31 }
 0x207   :  { %9296 = vmatpush3.xpose.msra.mxu0 %v10454_v28  ;;  %9152 = vmatprep.mubr.msk.f32.mxu1 %vm10089_vm1, %v10088_v9 }
 0x208   :  { %9155 = vmatprep.subr.mxu1 %v10088_v9  ;;  %9297 = vmatprep.mubr.msk.f32.mxu0 %vm10089_vm1, %v10088_v9 }
 0x209   :  { %9300 = vmatprep.subr.mxu0 %v10088_v9 }
 0x20d   :  { %9153 = vmatmul.mubr.f32.vlgmr.msra.gmra.mrb[4].mxu1 %v10424_v16 }
 0x20e   :  { %9156 = vmatpush3.xpose.msra.mxu1 %v10429_v18  ;;  %9298 = vmatmul.mubr.f32.vlgmr.msra.gmra.mrb[8].mxu0 %v3966_v35 }
 0x20f   :  { %9301 = vmatpush3.xpose.msra.mxu0 %v3977_v36  ;;  %9157 = vmatprep.mubr.msk.f32.mxu1 %vm10089_vm1, %v10088_v9 }
 0x210   :  { %9190 = vmatprep.subr.mxu1 %v10088_v9  ;;  %9302 = vmatprep.mubr.msk.f32.mxu0 %vm10089_vm1, %v10088_v9 }
 0x211   :  { %9305 = vmatprep.subr.mxu0 %v10088_v9 }
 0x215   :  { %9158 = vmatmul.mubr.f32.vlgmr.msra.gmra.mrb[4].mxu1 %v10424_v16 }
 0x216   :  { %9191 = vmatpush3.xpose.msra.mxu1 %v2513_v46  ;;  %9303 = vmatmul.mubr.f32.vlgmr.msra.gmra.mrb[8].mxu0 %v10449_v27 }
 0x217   :  { %9306 = vmatpush3.xpose.msra.mxu0 %v10454_v28  ;;  %9192 = vmatprep.mubr.msk.f32.mxu1 %vm10089_vm1, %v10088_v9 }
 0x218   :  { %9195 = vmatprep.subr.mxu1 %v10088_v9  ;;  %9307 = vmatprep.mubr.msk.f32.mxu0 %vm10089_vm1, %v10088_v9 }
 0x219   :  { %9193 = vmatmul.mubr.f32.vlgmr.msra.gmra.mrb[6].mxu1 %v2582_v53  ;;  %9340 = vmatprep.subr.mxu0 %v10088_v9 }
 0x21a   :  { %9196 = vmatpush3.xpose.msra.mxu1 %v2593_v54  ;;  %9197 = vmatprep.mubr.msk.f32.mxu1 %vm10089_vm1, %v10088_v9 }
 0x21b   :  { %9200 = vmatprep.subr.mxu1 %v10088_v9 }
 0x21e   :  { %9308 = vmatmul.mubr.f32.vlgmr.msra.gmra.mrb[8].mxu0 %v10449_v27 }
 0x21f   :  { %9341 = vmatpush3.msra.mxu0 %v10529_v55  ;;  %9342 = vmatprep.mubr.msk.f32.mxu0 %vm10089_vm1, %v10088_v9 }
 0x220   :  { %9345 = vmatprep.subr.mxu0 %v10088_v9 }
 0x221   :  { %9198 = vmatmul.mubr.f32.vlgmr.msra.gmra.mrb[6].mxu1 %v10498_v45 }
 0x222   :  { %9201 = vmatpush3.xpose.msra.mxu1 %v2590_v48  ;;  %9202 = vmatprep.mubr.msk.f32.mxu1 %vm10089_vm1, %v10088_v9 }
 0x223   :  { %9205 = vmatprep.subr.mxu1 %v10088_v9 }
 0x229   :  { %9203 = vmatmul.mubr.f32.vlgmr.msra.gmra.mrb[6].mxu1 %v2579_v47 }
 0x22a   :  { %9206 = vmatpush3.xpose.msra.mxu1 %v2513_v46  ;;  %9207 = vmatprep.mubr.msk.f32.mxu1 %vm10089_vm1, %v10088_v9 }
 0x22b   :  { %9210 = vmatprep.subr.mxu1 %v10088_v9 }
 0x231   :  { %9208 = vmatmul.mubr.f32.vlgmr.msra.gmra.mrb[6].mxu1 %v2580_v49 }
 0x232   :  { %9211 = vmatpush3.xpose.msra.mxu1 %v2591_v50  ;;  %9212 = vmatprep.mubr.msk.f32.mxu1 %vm10089_vm1, %v10088_v9 }
 0x233   :  { %9215 = vmatprep.subr.mxu1 %v10088_v9 }
 0x239   :  { %9213 = vmatmul.mubr.f32.vlgmr.msra.gmra.mrb[6].mxu1 %v10498_v45 }
 0x23a   :  { %9216 = vmatpush3.xpose.msra.mxu1 %v2513_v46  ;;  %9217 = vmatprep.mubr.msk.f32.mxu1 %vm10089_vm1, %v10088_v9 }
 0x23b   :  { %9250 = vmatprep.subr.mxu1 %v10088_v9 }
 0x241   :  { %9218 = vmatmul.mubr.f32.vlgmr.msra.gmra.mrb[6].mxu1 %v10498_v45 }
 0x242   :  { %9251 = vmatpush3.xpose.msra.mxu1 %v3445_v61  ;;  %9252 = vmatprep.mubr.msk.f32.mxu1 %vm10089_vm1, %v10088_v9 }
 0x243   :  { %9255 = vmatprep.subr.mxu1 %v10088_v9 }
 0x245   :  { %9253 = vmatmul.mubr.f32.vlgmr.msra.gmra.mrb[8].mxu1 %v3514_v4 }
 0x246   :  { %9256 = vmatpush3.xpose.msra.mxu1 %v3525_v5  ;;  %9257 = vmatprep.mubr.msk.f32.mxu1 %vm10089_vm1, %v10088_v9 }
 0x247   :  { %9260 = vmatprep.subr.mxu1 %v10088_v9 }
 0x24d   :  { %9258 = vmatmul.mubr.f32.vlgmr.msra.gmra.mrb[8].mxu1 %v3510_v60 }
 0x24e   :  { %9261 = vmatpush3.xpose.msra.mxu1 %v3522_v63  ;;  %9262 = vmatprep.mubr.msk.f32.mxu1 %vm10089_vm1, %v10088_v9 }
 0x24f   :  { %9265 = vmatprep.subr.mxu1 %v10088_v9 }
 0x255   :  { %9263 = vmatmul.mubr.f32.vlgmr.msra.gmra.mrb[8].mxu1 %v3511_v62 }
 0x256   :  { %9266 = vmatpush3.xpose.msra.mxu1 %v3445_v61  ;;  %9267 = vmatprep.mubr.msk.f32.mxu1 %vm10089_vm1, %v10088_v9 }
 0x257   :  { %9270 = vmatprep.subr.mxu1 %v10088_v9 }
 0x25d   :  { %9268 = vmatmul.mubr.f32.vlgmr.msra.gmra.mrb[8].mxu1 %v3512_v0 }
 0x25e   :  { %9271 = vmatpush3.xpose.msra.mxu1 %v3523_v1  ;;  %9272 = vmatprep.mubr.msk.f32.mxu1 %vm10089_vm1, %v10088_v9 }
 0x25f   :  { %9275 = vmatprep.subr.mxu1 %v10088_v9 }
 0x265   :  { %9273 = vmatmul.mubr.f32.vlgmr.msra.gmra.mrb[8].mxu1 %v3510_v60 }
 0x266   :  { %9276 = vmatpush3.xpose.msra.mxu1 %v3445_v61  ;;  %9277 = vmatprep.mubr.msk.f32.mxu1 %vm10089_vm1, %v10088_v9 }
 0x267   :  { %9310 = vmatprep.subr.mxu1 %v10088_v9 }
 0x26d   :  { %9278 = vmatmul.mubr.f32.vlgmr.msra.gmra.mrb[8].mxu1 %v3510_v60 }
 0x26e   :  { %9311 = vmatpush3.msra.mxu1 %v10572_v6  ;;  %9312 = vmatprep.mubr.msk.f32.mxu1 %vm10089_vm1, %v10088_v9 }
 0x26f   :  { %9315 = vmatprep.subr.mxu1 %v10088_v9 }
 0x290   :  { %v1090_v7 = vpop.f32.mrb[0].mxu1 }
 0x291   :  { %v1547_v8 = vmul.f32 0.25, %v1090_v7  ;;  %v9099_v10 = vpop.f32.mrb[1].mxu1 }
 0x293   :  { %v1550_v11 = vsel %vm1549_vm3, %v1547_v8, -inf }
 0x294   :  { %1551 = vmax.xlane.f32.xlu0 %v1550_v11 }
 0x299   :  { %v2476_v12 = vpop.f32.mrb[4].mxu0 }
 0x29a   :  { %v2481_v13 = vmul.f32 0.25, %v2476_v12  ;;  %v9189_v14 = vpop.f32.mrb[5].mxu0 }
 0x29c   :  { %v2485_v15 = vsel %vm1549_vm3, %v2481_v13, -inf }
 0x29d   :  { %2486 = vmax.xlane.f32.xlu0 %v2485_v15 }
 0x2bc   :  { %v1543_v16 = vpop.f32.mrb[2].mxu1 }
 0x2bd   :  { %v1548_v18 = vmul.f32 0.25, %v1543_v16  ;;  %v9129_v20 = vpop.f32.mrb[3].mxu1 }
 0x2bf   :  { %v1553_v21 = vsel %vm1549_vm3, %v1548_v18, -inf }
 0x2c0   :  { %1554 = vmax.xlane.f32.xlu0 %v1553_v21 }
 0x2c5   :  { %v3408_v22 = vpop.f32.mrb[6].mxu0 }
 0x2c6   :  { %v3413_v23 = vmul.f32 0.25, %v3408_v22  ;;  %v9249_v24 = vpop.f32.mrb[7].mxu0 }
 0x2c8   :  { %v3417_v25 = vsel %vm1549_vm3, %v3413_v23, -inf }
 0x2c9   :  { %3418 = vmax.xlane.f32.xlu0 %v3417_v25  ;;  %v4391_v25 = vstv %s10617_s19 }
 0x2e8   :  { %v2022_v26 = vpop.f32.mrb[4].mxu1 }
 0x2e9   :  { %v2480_v27 = vmul.f32 0.25, %v2022_v26  ;;  %v9159_v28 = vpop.f32.mrb[5].mxu1  ;;  %v4413_v26 = vstv %s10619_s20 }
 0x2eb   :  { %v2482_v29 = vsel %vm1549_vm3, %v2480_v27, -inf }
 0x2ec   :  { %2483 = vmax.xlane.f32.xlu1 %v2482_v29 }
 0x2f1   :  { %v4340_v30 = vpop.f32.mrb[8].mxu0 }
 0x2f2   :  { %v4345_v31 = vmul.f32 0.25, %v4340_v30  ;;  %v9309_v32 = vpop.f32.mrb[9].mxu0 }
 0x2f4   :  { %v4349_v33 = vsel %vm1549_vm3, %v4345_v31, -inf }
 0x2f5   :  { %4350 = vmax.xlane.f32.xlu0 %v4349_v33 }
 0x314   :  { %v2954_v34 = vpop.f32.mrb[6].mxu1 }
 0x315   :  { %v3412_v35 = vmul.f32 0.25, %v2954_v34  ;;  %v9219_v36 = vpop.f32.mrb[7].mxu1 }
 0x317   :  { %v3414_v37 = vsel %vm1549_vm3, %v3412_v35, -inf }
 0x318   :  { %3415 = vmax.xlane.f32.xlu1 %v3414_v37 }
 0x321   :  { %v1552_v38 = vpop.xlane.xlu0 %1551 }
 0x322   :  { %v1556_v42 = vsub.f32 %v1547_v8, %v1552_v38 }
 0x324   :  { %v1558_v43 = vmul.f32 1.442695, %v1556_v42  ;;  %v4373_v42 = vstv %s10641_s22 }
 0x32a   :  { %v2487_v39 = vpop.xlane.xlu0 %2486 }
 0x32b   :  { %v2489_v40 = vsub.f32 %v2481_v13, %v2487_v39 }
 0x32d   :  { %v2492_v41 = vmul.f32 1.442695, %v2489_v40 }
 0x32f   :  { %10013 = vpow2.f32 %v2492_v41 }
 0x330   :  { %10015 = vpow2.f32 %v1558_v43 }
 0x339   :  { %v10585_v44 = vpop.eup %10013 }
 0x33a   :  { %v2497_v45 = vsel %vm1549_vm3, %v10585_v44, 0.0  ;;  %v10016_v50 = vpop.eup %10015 }
 0x33b   :  { %2498 = vadd.xlane.f32.xlu0 %v2497_v45  ;;  %v1562_v51 = vsel %vm1549_vm3, %v10016_v50, 0.0  ;;  %v4395_v45 = vstv %s10643_s23 }
 0x340   :  { %v3886_v46 = vpop.f32.mrb[8].mxu1 }
 0x341   :  { %v4344_v47 = vmul.f32 0.25, %v3886_v46  ;;  %v9279_v48 = vpop.f32.mrb[9].mxu1  ;;  %v4417_v46 = vstv %s10645_s3 }
 0x343   :  { %v4346_v49 = vsel %vm1549_vm3, %v4344_v47, -inf }
 0x344   :  { %4347 = vmax.xlane.f32.xlu1 %v4346_v49 }
 0x348   :  { %1563 = vadd.xlane.f32.xlu1 %v1562_v51 }
 0x34d   :  { %v1555_v52 = vpop.xlane.xlu0 %1554 }
 0x34e   :  { %v1557_v53 = vsub.f32 %v1548_v18, %v1555_v52 }
 0x350   :  { %v1560_v54 = vmul.f32 1.442695, %v1557_v53 }
 0x352   :  { %10017 = vpow2.f32 %v1560_v54 }
 0x356   :  { %v3419_v58 = vpop.xlane.xlu0 %3418 }
 0x357   :  { %v3421_v59 = vsub.f32 %v3413_v23, %v3419_v58  ;;  %v4369_v23 = vstv %s10615_s18 }
 0x359   :  { %v3424_v62 = vmul.f32 1.442695, %v3421_v59 }
 0x35c   :  { %v10591_v56 = vpop.eup %10017 }
 0x35d   :  { %v1565_v57 = vsel %vm1549_vm3, %v10591_v56, 0.0 }
 0x35e   :  { %1566 = vadd.xlane.f32.xlu1 %v1565_v57  ;;  %v4379_v57 = vstv %s10649_s25 }
 0x379   :  { %v2484_v60 = vpop.xlane.xlu1 %2483 }
 0x37a   :  { %v2488_v61 = vsub.f32 %v2480_v27, %v2484_v60  ;;  %v4435_v27 = vstv %s10621_s21 }
 0x37c   :  { %v2490_v63 = vmul.f32 1.442695, %v2488_v61 }
 0x37e   :  { %10019 = vpow2.f32 %v2490_v63 }
 0x37f   :  { %10021 = vpow2.f32 %v3424_v62  ;;  %v4401_v62 = vstv %s10651_s26 }
 0x382   :  { %v4351_v0 = vpop.xlane.xlu0 %4350 }
 0x383   :  { %v4353_v1 = vsub.f32 %v4345_v31, %v4351_v0 }
 0x385   :  { %v4356_v2 = vmul.f32 1.442695, %v4353_v1  ;;  %v4423_v1 = vstv %s10653_s27 }
 0x387   :  { %10023 = vpow2.f32 %v4356_v2 }
 0x388   :  { %v10595_v3 = vpop.eup %10019 }
 0x389   :  { %v2494_v4 = vsel %vm1549_vm3, %v10595_v3, 0.0  ;;  %v10599_v5 = vpop.eup %10021 }
 0x38a   :  { %2495 = vadd.xlane.f32.xlu0 %v2494_v4  ;;  %v3429_v7 = vsel %vm1549_vm3, %v10599_v5, 0.0 }
 0x38e   :  { %3430 = vadd.xlane.f32.xlu0 %v3429_v7 }
 0x391   :  { %v10603_v8 = vpop.eup %10023 }
 0x392   :  { %v4361_v10 = vsel %vm1549_vm3, %v10603_v8, 0.0 }
 0x393   :  { %4362 = vadd.xlane.f32.xlu0 %v4361_v10 }
 0x3a5   :  { %v3416_v11 = vpop.xlane.xlu1 %3415 }
 0x3a6   :  { %v3420_v12 = vsub.f32 %v3412_v35, %v3416_v11 }
 0x3a8   :  { %v3422_v13 = vmul.f32 1.442695, %v3420_v12  ;;  %v4385_v12 = vstv %s10659_s29 }
 0x3a9   :  { %5864 = vrot.lane.b32.xlu0 %v10279_v19, %s10090_s0 }
 0x3aa   :  { %10025 = vpow2.f32 %v3422_v13  ;;  %v4407_v13 = vstv %s10661_s30  ;;  %s10097_s30 = smov [#allocation5]  }
 0x3ad   :  { %7240 = vrot.lane.b32.xlu0 %v10272_v17, %s10095_s16 }
 0x3b4   :  { %v10611_v14 = vpop.eup %10025 }
 0x3b5   :  { %v3426_v15 = vsel %vm1549_vm3, %v10611_v14, 0.0 }
 0x3b6   :  { %3427 = vadd.xlane.f32.xlu1 %v3426_v15 }
 0x3c8   :  { %v2499_v34 = vpop.xlane.xlu0 %2498 }
 0x3d1   :  { %v4348_v16 = vpop.xlane.xlu1 %4347 }
 0x3d2   :  { %v4352_v18 = vsub.f32 %v4344_v47, %v4348_v16  ;;  %v4439_v47 = vstv %s10647_s24 }
 0x3d4   :  { %v4354_v20 = vmul.f32 1.442695, %v4352_v18  ;;  %v4429_v18 = vstv %s10667_s5  ;;  %s8782_s5 = sshll.u32 %s10097_s30, 4  ;;  %s8783_s5 = int_to_ptr.vmem [resolvable:$true] %s8782_s5 }
 0x3d5   :  { %v1564_v21 = vpop.xlane.xlu1 %1563  ;;  %p10066_p6 = scmp.lt.s32.totalorder %s8783_s5, %s8783_s5 }
 0x3d6   :  { %10027 = vpow2.f32 %v4354_v20 }
 0x3d7   :  { %10029 = vrcp.f32 %v1564_v21 }
 0x3e0   :  { %v10623_v22 = vpop.eup %10027 }
 0x3e1   :  { %v10030_v24 = vpop.eup %10029  ;;  %v4358_v28 = vsel %vm1549_vm3, %v10623_v22, 0.0 }
 0x3e2   :  { %v1569_v29 = vmul.f32 %v10030_v24, %v10016_v50  ;;  %4359 = vadd.xlane.f32.xlu1 %v4358_v28 }
 0x3e4   :  { %v4370_v30 = vmul.f32 %v4369_v23, %v1569_v29  ;;  %v4392_v31 = vmul.f32 %v4391_v25, %v1569_v29  ;;  %v4414_v32 = vmul.f32 %v4413_v26, %v1569_v29  ;;  %v4436_v33 = vmul.f32 %v4435_v27, %v1569_v29 }
 0x3eb   :  { %v1567_v35 = vpop.xlane.xlu1 %1566 }
 0x3ec   :  { %10031 = vrcp.f32 %v1567_v35 }
 0x3f3   :  { %5411 = vrot.lane.b32.xlu1 %v10272_v17, %s10090_s0  ;;  %s10867_s0 = sld [smem:[#allocation2 + $0x203]] }
 0x3f6   :  { %v10032_v39 = vpop.eup %10031 }
 0x3f7   :  { %6326 = vrot.lane.b32.xlu1 %v10272_v17, %s10093_s14  ;;  %v1571_v48 = vmul.f32 %v10032_v39, %v10591_v56 }
 0x3f9   :  { %v4371_v61 = vmul.f32 %v4369_v23, %v1571_v48  ;;  %v4393_v0 = vmul.f32 %v4391_v25, %v1571_v48  ;;  %v4415_v2 = vmul.f32 %v4413_v26, %v1571_v48  ;;  %v4451_v23 = vstv %s10669_s6  ;;  %s10061_s6 = scalar_lea.vmem %s8783_s5, 256 }
 0x3fa   :  { %p10062_p5 = scmp.ne.s32.totalorder %s8783_s5, %s10061_s6  ;;  %p10067_p7 = scmp.lt.s32.totalorder %s10061_s6, %s10061_s6 }
 0x3fb   :  { %6778 = vrot.lane.b32.xlu1 %v10279_v19, %s10093_s14 }
 0x3fc   :  { %p10068_p8 = por %p10067_p7, %p10066_p6 }
 0x3fe   :  { %p10069_p9 = pnand %p10068_p8, %p10062_p5 }
 0x3ff   :  { %7692 = vrot.lane.b32.xlu1 %v10279_v19, %s10095_s16 }
 0x417   :  { %v2496_v36 = vpop.xlane.xlu0 %2495 }
 0x418   :  { %10033 = vrcp.f32 %v2496_v36 }
 0x419   :  { %10035 = vrcp.f32 %v2499_v34 }
 0x41b   :  { %v3431_v37 = vpop.xlane.xlu0 %3430 }
 0x41c   :  { %10037 = vrcp.f32 %v3431_v37 }
 0x420   :  { %v4363_v38 = vpop.xlane.xlu0 %4362 }
 0x421   :  { %10039 = vrcp.f32 %v4363_v38 }
 0x422   :  { %v10034_v40 = vpop.eup %10033 }
 0x423   :  { %v10036_v41 = vpop.eup %10035  ;;  %v2501_v43 = vmul.f32 %v10034_v40, %v10595_v3  ;;  %v4445_v3 = vstv %s10655_s28 }
 0x424   :  { %v2503_v54 = vmul.f32 %v10036_v41, %v10585_v44 }
 0x425   :  { %v4374_v49 = vmul.f32 %v4373_v42, %v2501_v43  ;;  %v4396_v50 = vmul.f32 %v4395_v45, %v2501_v43  ;;  %v4418_v51 = vmul.f32 %v4417_v46, %v2501_v43  ;;  %v4440_v52 = vmul.f32 %v4439_v47, %v2501_v43 }
 0x426   :  { %v10038_v53 = vpop.eup %10037  ;;  %v4375_v44 = vmul.f32 %v4373_v42, %v2503_v54  ;;  %v4397_v10 = vmul.f32 %v4395_v45, %v2503_v54  ;;  %v4419_v15 = vmul.f32 %v4417_v46, %v2503_v54  ;;  %v4441_v25 = vmul.f32 %v4439_v47, %v2503_v54 }
 0x427   :  { %v10673_v58 = vadd.f32 %v4374_v49, %v4370_v30  ;;  %v10675_v59 = vadd.f32 %v4396_v50, %v4392_v31  ;;  %v10677_v56 = vadd.f32 %v4418_v51, %v4414_v32  ;;  %v10679_v60 = vadd.f32 %v4440_v52, %v4436_v33 }
 0x428   :  { %v3435_v63 = vmul.f32 %v10038_v53, %v10599_v5  ;;  %v4377_v16 = vadd.f32 %v4375_v44, %v4371_v61  ;;  %v4437_v5 = vmul.f32 %v4435_v27, %v1571_v48  ;;  %v4399_v20 = vadd.f32 %v4397_v10, %v4393_v0 }
 0x429   :  { %v4421_v26 = vadd.f32 %v4419_v15, %v4415_v2 }
 0x42a   :  { %v4381_v4 = vmul.f32 %v4379_v57, %v3435_v63  ;;  %v4403_v11 = vmul.f32 %v4401_v62, %v3435_v63  ;;  %v4425_v21 = vmul.f32 %v4423_v1, %v3435_v63  ;;  %v4447_v29 = vmul.f32 %v4445_v3, %v3435_v63 }
 0x42b   :  { %v10040_v7 = vpop.eup %10039  ;;  %v4443_v34 = vadd.f32 %v4441_v25, %v4437_v5 }
 0x42c   :  { %v4367_v24 = vmul.f32 %v10040_v7, %v10603_v8  ;;  %v4383_v28 = vadd.f32 %v4381_v4, %v4377_v16  ;;  %v4405_v30 = vadd.f32 %v4403_v11, %v4399_v20  ;;  %v4427_v27 = vadd.f32 %v4425_v21, %v4421_v26 }
 0x42d   :  { %v4449_v38 = vadd.f32 %v4447_v29, %v4443_v34  ;;  %v4495_v16 = vstv %s10702_s7  ;;  %v4499_v29 = vstv %s10704_s8 }
 0x42e   :  { %v4387_v31 = vmul.f32 %v4385_v12, %v4367_v24  ;;  %v4409_v32 = vmul.f32 %v4407_v13, %v4367_v24  ;;  %v4431_v33 = vmul.f32 %v4429_v18, %v4367_v24  ;;  %v4453_v37 = vmul.f32 %v4451_v23, %v4367_v24 }
 0x430   :  { %v4389_v35 = vadd.f32 %v4387_v31, %v4383_v28  ;;  %v4411_v36 = vadd.f32 %v4409_v32, %v4405_v30  ;;  %v4433_v39 = vadd.f32 %v4431_v33, %v4427_v27  ;;  %v4455_v40 = vadd.f32 %v4453_v37, %v4449_v38 }
 0x431   :  { %v5403_v27 = vstv %s10732_s9 }
 0x432   :  { %v4457_v8 = vadd.f32 %v4411_v36, %v4389_v35 }
 0x434   :  { %v4459_v41 = vadd.f32 %v4457_v8, %v4433_v39 }
 0x436   :  { %v4461_v42 = vadd.f32 %v4459_v41, %v4455_v40 }
 0x438   :  { %v4463_v43 = vmul.f32 0.25, %v4461_v42 }
 0x43a   :  { %v4469_v45 = vsub.f32 %v4411_v36, %v4463_v43  ;;  %v4475_v46 = vsub.f32 %v4433_v39, %v4463_v43  ;;  %v4465_v47 = vsub.f32 %v4389_v35, %v4463_v43  ;;  %v4481_v49 = vsub.f32 %v4455_v40, %v4463_v43  ;;  %v5865_v40 = vpop.permute.xlu0 %5864 }
 0x43b   :  { %v5407_v36 = vstv %s10735_s10 }
 0x43c   :  { %v4471_v48 = vmul.f32 %v4469_v45, %v4469_v45  ;;  %v4467_v50 = vmul.f32 %v4465_v47, %v4465_v47  ;;  %v4477_v51 = vmul.f32 %v4475_v46, %v4475_v46  ;;  %v4483_v53 = vmul.f32 %v4481_v49, %v4481_v49 }
 0x43e   :  { %v4473_v52 = vadd.f32 %v4471_v48, %v4467_v50 }
 0x440   :  { %v4479_v54 = vadd.f32 %v4477_v51, %v4473_v52 }
 0x442   :  { %v4485_v63 = vadd.f32 %v4483_v53, %v4479_v54 }
 0x443   :  { %v3428_v61 = vpop.xlane.xlu1 %3427 }
 0x444   :  { %10041 = vrcp.f32 %v3428_v61  ;;  %v4487_v0 = vmul.f32 0.25, %v4485_v63 }
 0x446   :  { %v4489_v44 = vadd.f32 1e-05, %v4487_v0 }
 0x448   :  { %10043 = vrsqrt.f32 %v4489_v44 }
 0x44e   :  { %v10042_v2 = vpop.eup %10041 }
 0x44f   :  { %v3433_v4 = vmul.f32 %v10042_v2, %v10611_v14 }
 0x451   :  { %v4380_v7 = vmul.f32 %v4379_v57, %v3433_v4  ;;  %v4402_v10 = vmul.f32 %v4401_v62, %v3433_v4  ;;  %v4424_v11 = vmul.f32 %v4423_v1, %v3433_v4  ;;  %v4446_v15 = vmul.f32 %v4445_v3, %v3433_v4 }
 0x452   :  { %v10044_v5 = vpop.eup %10043  ;;  %v5032_v1 = vsub.f32 %v10279_v19, %v10529_v55 }
 0x453   :  { %v4382_v20 = vadd.f32 %v4380_v7, %v10673_v58  ;;  %v4404_v21 = vadd.f32 %v4402_v10, %v10675_v59  ;;  %v4426_v24 = vadd.f32 %v4424_v11, %v10677_v56  ;;  %v4448_v25 = vadd.f32 %v4446_v15, %v10679_v60 }
 0x454   :  { %v4493_v26 = vmul.f32 %v10044_v5, %v4465_v47  ;;  %v10714_v28 = vmul.f32 %v10044_v5, %v4475_v46  ;;  %v10716_v14 = vmul.f32 %v10044_v5, %v4481_v49  ;;  %v5033_v56 = vand.u32 4294901760, %v5032_v1 }
 0x455   :  { %v5401_v34 = vmul.f32 %v10044_v5, %v4469_v45  ;;  %v10763_v46 = vand.u32 4294901760, %v5865_v40 }
 0x456   :  { %v4497_v57 = vmul.f32 %v4495_v16, %v4493_v26  ;;  %v5034_v30 = vsub.f32 %v5032_v1, %v5033_v56 }
 0x457   :  { %v5405_v35 = vmul.f32 %v5403_v27, %v5401_v34 }
 0x458   :  { %v4501_v62 = vadd.f32 %v4499_v29, %v4497_v57  ;;  %v5035_v33 = vand.u32 4294901760, %v5034_v30 }
 0x459   :  { %v5409_v37 = vadd.f32 %v5407_v36, %v5405_v35 }
 0x45a   :  { %v4952_v58 = vsel %vm1549_vm3, %v4501_v62, 0  ;;  %v6319_v62 = vstv %s10790_s1 }
 0x45b   :  { %v10726_v59 = vand.u32 4294901760, %v4952_v58  ;;  %v5868_v8 = vsel %vm1549_vm3, %v5409_v37, 0 }
 0x45c   :  { %v10761_v45 = vand.u32 4294901760, %v5868_v8 }
 0x45d   :  { %v5021_v60 = vsub.f32 %v4952_v58, %v10726_v59  ;;  %v6323_v58 = vstv %s10793_s11 }
 0x45f   :  { %v5022_v3 = vand.u32 4294901760, %v5021_v60 }
 0x461   :  { %v5023_v31 = vsub.f32 %v5021_v60, %v5022_v3 }
 0x463   :  { %v5024_v32 = vand.u32 4294901760, %v5023_v31 }
 0x465   :  { %9343 = vmatmul.mubr.f32.vlgmr.msra.gmra.mrb[10].mxu0 %v5024_v32 }
 0x466   :  { %9346 = vmatpush3.msra.mxu0 %v5035_v33  ;;  %9347 = vmatprep.mubr.msk.f32.mxu0 %vm10089_vm1, %v10088_v9 }
 0x467   :  { %9350 = vmatprep.subr.mxu0 %v10088_v9 }
 0x46d   :  { %9348 = vmatmul.mubr.f32.vlgmr.msra.gmra.mrb[10].mxu0 %v10726_v59 }
 0x46e   :  { %9351 = vmatpush3.msra.mxu0 %v5032_v1  ;;  %9352 = vmatprep.mubr.msk.f32.mxu0 %vm10089_vm1, %v10088_v9  ;;  %v6321_v1 = vmul.f32 %v6319_v62, %v10714_v28 }
 0x46f   :  { %9355 = vmatprep.subr.mxu0 %v10088_v9  ;;  %v4360_v19 = vpop.xlane.xlu1 %4359 }
 0x470   :  { %10045 = vrcp.f32 %v4360_v19  ;;  %v6325_v28 = vadd.f32 %v6323_v58, %v6321_v1  ;;  %v4583_v19 = vsub.f32 %v10272_v17, %v10572_v6 }
 0x472   :  { %v6782_v34 = vsel %vm1549_vm3, %v6325_v28, 0 }
 0x473   :  { %v10799_v57 = vpop.permute.xlu1 %5411 }
 0x475   :  { %9353 = vmatmul.mubr.f32.vlgmr.msra.gmra.mrb[10].mxu0 %v5021_v60 }
 0x476   :  { %9356 = vmatpush3.msra.mxu0 %v10529_v55  ;;  %9357 = vmatprep.mubr.msk.f32.mxu0 %vm10089_vm1, %v10088_v9 }
 0x477   :  { %9360 = vmatprep.subr.mxu0 %v10088_v9 }
 0x47a   :  { %v10046_v38 = vpop.eup %10045 }
 0x47b   :  { %v4365_v39 = vmul.f32 %v10046_v38, %v10623_v22 }
 0x47d   :  { %9358 = vmatmul.mubr.f32.vlgmr.msra.gmra.mrb[10].mxu0 %v5022_v3  ;;  %v4386_v41 = vmul.f32 %v4385_v12, %v4365_v39  ;;  %v4408_v42 = vmul.f32 %v4407_v13, %v4365_v39  ;;  %v4430_v43 = vmul.f32 %v4429_v18, %v4365_v39  ;;  %v4452_v48 = vmul.f32 %v4451_v23, %v4365_v39 }
 0x47e   :  { %9361 = vmatpush3.msra.mxu0 %v5033_v56  ;;  %9362 = vmatprep.mubr.msk.f32.mxu0 %vm10089_vm1, %v10088_v9  ;;  %v10768_v13 = vsub.f32 %v5868_v8, %v10761_v45  ;;  %v10771_v18 = vsub.f32 %v5865_v40, %v10763_v46  ;;  %v10810_v56 = vpop.permute.xlu1 %6326  ;;  %v10832_v39 = vand.u32 4294901760, %v6782_v34 }
 0x47f   :  { %9365 = vmatprep.subr.mxu0 %v10088_v9  ;;  %v4388_v22 = vadd.f32 %v4386_v41, %v4382_v20  ;;  %v4410_v47 = vadd.f32 %v4408_v42, %v4404_v21  ;;  %v4432_v49 = vadd.f32 %v4430_v43, %v4426_v24  ;;  %v4454_v50 = vadd.f32 %v4452_v48, %v4448_v25 }
 0x480   :  { %v5938_v23 = vand.u32 4294901760, %v10768_v13  ;;  %v5949_v53 = vand.u32 4294901760, %v10771_v18  ;;  %v10838_v41 = vsub.f32 %v6782_v34, %v10832_v39 }
 0x481   :  { %v4456_v12 = vadd.f32 %v4410_v47, %v4388_v22 }
 0x482   :  { %v5939_v2 = vsub.f32 %v10768_v13, %v5938_v23  ;;  %v5950_v4 = vsub.f32 %v10771_v18, %v5949_v53  ;;  %v6779_v35 = vpop.permute.xlu1 %6778  ;;  %v6852_v48 = vand.u32 4294901760, %v10838_v41 }
 0x483   :  { %v4458_v51 = vadd.f32 %v4456_v12, %v4432_v49 }
 0x484   :  { %v5940_v15 = vand.u32 4294901760, %v5939_v2  ;;  %v5951_v5 = vand.u32 4294901760, %v5950_v4 }
 0x485   :  { %9363 = vmatmul.mubr.f32.vlgmr.msra.gmra.mrb[10].mxu0 %v10726_v59  ;;  %v4460_v52 = vadd.f32 %v4458_v51, %v4454_v50 }
 0x486   :  { %9366 = vmatpush3.msra.mxu0 %v10529_v55  ;;  %9367 = vmatprep.mubr.msk.f32.mxu0 %vm10089_vm1, %v10088_v9 }
 0x487   :  { %9400 = vmatprep.subr.mxu0 %v10088_v9  ;;  %v4462_v54 = vmul.f32 0.25, %v4460_v52 }
 0x489   :  { %v4468_v61 = vsub.f32 %v4410_v47, %v4462_v54  ;;  %v4474_v63 = vsub.f32 %v4432_v49, %v4462_v54  ;;  %v4480_v0 = vsub.f32 %v4454_v50, %v4462_v54  ;;  %v4464_v44 = vsub.f32 %v4388_v22, %v4462_v54 }
 0x48a   :  { %v7233_v50 = vstv %s10867_s0 }
 0x48b   :  { %v4470_v7 = vmul.f32 %v4468_v61, %v4468_v61  ;;  %v4466_v55 = vmul.f32 %v4464_v44, %v4464_v44  ;;  %v4476_v10 = vmul.f32 %v4474_v63, %v4474_v63  ;;  %v4482_v20 = vmul.f32 %v4480_v0, %v4480_v0 }
 0x48c   :  { %v7235_v52 = vmul.f32 %v7233_v50, %v10716_v14 }
 0x48d   :  { %9368 = vmatmul.mubr.f32.vlgmr.msra.gmra.mrb[10].mxu0 %v10726_v59  ;;  %v4472_v11 = vadd.f32 %v4470_v7, %v4466_v55 }
 0x48e   :  { %9401 = vmatpush3.msra.mxu0 %v10763_v46  ;;  %9402 = vmatprep.mubr.msk.f32.mxu0 %vm10089_vm1, %v10088_v9 }
 0x48f   :  { %9405 = vmatprep.subr.mxu0 %v10088_v9  ;;  %v4478_v21 = vadd.f32 %v4476_v10, %v4472_v11 }
 0x491   :  { %9403 = vmatmul.mubr.f32.vlgmr.msra.gmra.mrb[12].mxu0 %v5940_v15  ;;  %v4484_v24 = vadd.f32 %v4482_v20, %v4478_v21 }
 0x492   :  { %9406 = vmatpush3.msra.mxu0 %v5951_v5  ;;  %9407 = vmatprep.mubr.msk.f32.mxu0 %vm10089_vm1, %v10088_v9 }
 0x493   :  { %9410 = vmatprep.subr.mxu0 %v10088_v9  ;;  %v4486_v25 = vmul.f32 0.25, %v4484_v24 }
 0x495   :  { %v4488_v26 = vadd.f32 1e-05, %v4486_v25 }
 0x497   :  { %10047 = vrsqrt.f32 %v4488_v26 }
 0x499   :  { %9408 = vmatmul.mubr.f32.vlgmr.msra.gmra.mrb[12].mxu0 %v10761_v45 }
 0x49a   :  { %9411 = vmatpush3.msra.mxu0 %v10771_v18  ;;  %9412 = vmatprep.mubr.msk.f32.mxu0 %vm10089_vm1, %v10088_v9 }
 0x49b   :  { %9415 = vmatprep.subr.mxu0 %v10088_v9 }
 0x4a1   :  { %9413 = vmatmul.mubr.f32.vlgmr.msra.gmra.mrb[12].mxu0 %v10768_v13  ;;  %v10048_v59 = vpop.eup %10047 }
 0x4a2   :  { %9416 = vmatpush3.msra.mxu0 %v10763_v46  ;;  %9417 = vmatprep.mubr.msk.f32.mxu0 %vm10089_vm1, %v10088_v9  ;;  %v4492_v60 = vmul.f32 %v10048_v59, %v4464_v44  ;;  %v5400_v3 = vmul.f32 %v10048_v59, %v4468_v61  ;;  %v10813_v30 = vmul.f32 %v10048_v59, %v4474_v63 }
 0x4a3   :  { %9420 = vmatprep.subr.mxu0 %v10088_v9  ;;  %v10815_v31 = vmul.f32 %v10048_v59, %v4480_v0  ;;  %v7693_v0 = vpop.permute.xlu1 %7692 }
 0x4a4   :  { %v4496_v32 = vmul.f32 %v4495_v16, %v4492_v60  ;;  %v4584_v16 = vand.u32 4294901760, %v4583_v19  ;;  %v10924_v7 = vand.u32 4294901760, %v7693_v0  ;;  %v6320_v1 = vmul.f32 %v6319_v62, %v10813_v30 }
 0x4a6   :  { %v4500_v33 = vadd.f32 %v4499_v29, %v4496_v32  ;;  %v10834_v29 = vand.u32 4294901760, %v6779_v35  ;;  %v4585_v40 = vsub.f32 %v4583_v19, %v4584_v16  ;;  %v7776_v11 = vsub.f32 %v7693_v0, %v10924_v7 }
 0x4a7   :  { %v6324_v59 = vadd.f32 %v6323_v58, %v6320_v1 }
 0x4a8   :  { %v4503_v37 = vsel %vm1549_vm3, %v4500_v33, 0  ;;  %v10841_v42 = vsub.f32 %v6779_v35, %v10834_v29  ;;  %v4586_v47 = vand.u32 4294901760, %v4585_v40  ;;  %v7777_v21 = vand.u32 4294901760, %v7776_v11 }
 0x4a9   :  { %9418 = vmatmul.mubr.f32.vlgmr.msra.gmra.mrb[12].mxu0 %v5938_v23  ;;  %v10829_v38 = vand.u32 4294901760, %v4503_v37  ;;  %v7237_v23 = vstv %s10873_s12  ;;  %v6330_v62 = vsel %vm1549_vm3, %v6324_v59, 0  ;;  %v7234_v35 = vmul.f32 %v7233_v50, %v10815_v31 }
 0x4aa   :  { %9421 = vmatpush3.msra.mxu0 %v5949_v53  ;;  %9422 = vmatprep.mubr.msk.f32.mxu0 %vm10089_vm1, %v10088_v9  ;;  %v6863_v49 = vand.u32 4294901760, %v10841_v42  ;;  %v10897_v53 = vand.u32 4294901760, %v10799_v57  ;;  %v7239_v14 = vadd.f32 %v7237_v23, %v7235_v52  ;;  %v7778_v25 = vsub.f32 %v7776_v11, %v7777_v21  ;;  %v8175_v52 = vld [vmem:[%s11143_s2] sm:$0xff] }
 0x4ab   :  { %9425 = vmatprep.subr.mxu0 %v10088_v9  ;;  %v4572_v17 = vsub.f32 %v4503_v37, %v10829_v38  ;;  %v6398_v60 = vand.u32 4294901760, %v6330_v62  ;;  %v7238_v37 = vadd.f32 %v7237_v23, %v7234_v35  ;;  %v8176_v23 = vld [vmem:[%s11143_s2 + $0x8] sm:$0xff] }
 0x4ac   :  { %v6864_v12 = vsub.f32 %v10841_v42, %v6863_v49  ;;  %v10910_v61 = vsub.f32 %v10799_v57, %v10897_v53  ;;  %v7696_v63 = vsel %vm1549_vm3, %v7239_v14, 0  ;;  %v7779_v57 = vand.u32 4294901760, %v7778_v25 }
 0x4ad   :  { %v4573_v8 = vand.u32 4294901760, %v4572_v17  ;;  %v10922_v4 = vand.u32 4294901760, %v7696_v63  ;;  %v6399_v58 = vsub.f32 %v6330_v62, %v6398_v60  ;;  %v8199_v14 = vand.u32 4294901760, %v8176_v23 }
 0x4ae   :  { %v6865_v18 = vand.u32 4294901760, %v6864_v12  ;;  %v5496_v2 = vand.u32 4294901760, %v10910_v61 }
 0x4af   :  { %v4574_v43 = vsub.f32 %v4572_v17, %v4573_v8  ;;  %v7765_v10 = vsub.f32 %v7696_v63, %v10922_v4  ;;  %v6400_v28 = vand.u32 4294901760, %v6399_v58 }
 0x4b0   :  { %v5497_v55 = vsub.f32 %v10910_v61, %v5496_v2 }
 0x4b1   :  { %9423 = vmatmul.mubr.f32.vlgmr.msra.gmra.mrb[12].mxu0 %v10761_v45  ;;  %v4575_v22 = vand.u32 4294901760, %v4574_v43  ;;  %v7766_v20 = vand.u32 4294901760, %v7765_v10  ;;  %v6401_v33 = vsub.f32 %v6399_v58, %v6400_v28 }
 0x4b2   :  { %9426 = vmatpush3.msra.mxu0 %v10763_v46  ;;  %9427 = vmatprep.mubr.msk.f32.mxu0 %vm10089_vm1, %v10088_v9  ;;  %v6853_v46 = vsub.f32 %v10838_v41, %v6852_v48  ;;  %v5498_v5 = vand.u32 4294901760, %v5497_v55 }
 0x4b3   :  { %9460 = vmatprep.subr.mxu0 %v10088_v9  ;;  %9313 = vmatmul.mubr.f32.vlgmr.msra.gmra.mrb[10].mxu1 %v4575_v22  ;;  %v7767_v24 = vsub.f32 %v7765_v10, %v7766_v20 }
 0x4b4   :  { %9316 = vmatpush3.msra.mxu1 %v4586_v47  ;;  %9317 = vmatprep.mubr.msk.f32.mxu1 %vm10089_vm1, %v10088_v9  ;;  %v6854_v13 = vand.u32 4294901760, %v6853_v46 }
 0x4b5   :  { %9320 = vmatprep.subr.mxu1 %v10088_v9  ;;  %v7768_v26 = vand.u32 4294901760, %v7767_v24 }
 0x4b9   :  { %9428 = vmatmul.mubr.f32.vlgmr.msra.gmra.mrb[12].mxu0 %v10761_v45  ;;  %v5404_v45 = vmul.f32 %v5403_v27, %v5400_v3  ;;  %v6333_v3 = vand.u32 4294901760, %v10810_v56 }
 0x4ba   :  { %9461 = vmatpush3.msra.mxu0 %v10834_v29  ;;  %9462 = vmatprep.mubr.msk.f32.mxu0 %vm10089_vm1, %v10088_v9 }
 0x4bb   :  { %9465 = vmatprep.subr.mxu0 %v10088_v9  ;;  %9318 = vmatmul.mubr.f32.vlgmr.msra.gmra.mrb[10].mxu1 %v10829_v38  ;;  %v5408_v27 = vadd.f32 %v5407_v36, %v5404_v45  ;;  %v6410_v30 = vsub.f32 %v10810_v56, %v6333_v3 }
 0x4bc   :  { %9321 = vmatpush3.msra.mxu1 %v4583_v19  ;;  %9322 = vmatprep.mubr.msk.f32.mxu1 %vm10089_vm1, %v10088_v9  ;;  %v6402_v19 = vand.u32 4294901760, %v6401_v33 }
 0x4bd   :  { %9463 = vmatmul.mubr.f32.vlgmr.msra.gmra.mrb[14].mxu0 %v6854_v13  ;;  %9325 = vmatprep.subr.mxu1 %v10088_v9  ;;  %v5415_v51 = vsel %vm1549_vm3, %v5408_v27, 0  ;;  %v6411_v32 = vand.u32 4294901760, %v6410_v30 }
 0x4be   :  { %9466 = vmatpush3.msra.mxu0 %v6865_v18  ;;  %9467 = vmatprep.mubr.msk.f32.mxu0 %vm10089_vm1, %v10088_v9  ;;  %v10894_v36 = vand.u32 4294901760, %v5415_v51 }
 0x4bf   :  { %9470 = vmatprep.subr.mxu0 %v10088_v9  ;;  %v6412_v56 = vsub.f32 %v6410_v30, %v6411_v32 }
 0x4c0   :  { %v10906_v54 = vsub.f32 %v5415_v51, %v10894_v36 }
 0x4c1   :  { %v6413_v34 = vand.u32 4294901760, %v6412_v56 }
 0x4c2   :  { %v5485_v44 = vand.u32 4294901760, %v10906_v54 }
 0x4c3   :  { %9323 = vmatmul.mubr.f32.vlgmr.msra.gmra.mrb[10].mxu1 %v4572_v17 }
 0x4c4   :  { %9326 = vmatpush3.msra.mxu1 %v10572_v6  ;;  %9327 = vmatprep.mubr.msk.f32.mxu1 %vm10089_vm1, %v10088_v9 }
 0x4c5   :  { %9468 = vmatmul.mubr.f32.vlgmr.msra.gmra.mrb[14].mxu0 %v10832_v39  ;;  %9330 = vmatprep.subr.mxu1 %v10088_v9 }
 0x4c6   :  { %9471 = vmatpush3.msra.mxu0 %v10841_v42  ;;  %9472 = vmatprep.mubr.msk.f32.mxu0 %vm10089_vm1, %v10088_v9 }
 0x4c7   :  { %9475 = vmatprep.subr.mxu0 %v10088_v9 }
 0x4cb   :  { %9328 = vmatmul.mubr.f32.vlgmr.msra.gmra.mrb[10].mxu1 %v4573_v8 }
 0x4cc   :  { %9331 = vmatpush3.msra.mxu1 %v4584_v16  ;;  %9332 = vmatprep.mubr.msk.f32.mxu1 %vm10089_vm1, %v10088_v9  ;;  %v7241_v16 = vpop.permute.xlu0 %7240 }
 0x4cd   :  { %9473 = vmatmul.mubr.f32.vlgmr.msra.gmra.mrb[14].mxu0 %v10838_v41  ;;  %9335 = vmatprep.subr.mxu1 %v10088_v9 }
 0x4ce   :  { %9476 = vmatpush3.msra.mxu0 %v10834_v29  ;;  %9477 = vmatprep.mubr.msk.f32.mxu0 %vm10089_vm1, %v10088_v9 }
 0x4cf   :  { %9480 = vmatprep.subr.mxu0 %v10088_v9 }
 0x4d3   :  { %9333 = vmatmul.mubr.f32.vlgmr.msra.gmra.mrb[10].mxu1 %v10829_v38 }
 0x4d4   :  { %9336 = vmatpush3.msra.mxu1 %v10572_v6  ;;  %9337 = vmatprep.mubr.msk.f32.mxu1 %vm10089_vm1, %v10088_v9  ;;  %v5486_v6 = vsub.f32 %v10906_v54, %v5485_v44 }
 0x4d5   :  { %9478 = vmatmul.mubr.f32.vlgmr.msra.gmra.mrb[14].mxu0 %v6852_v48  ;;  %9370 = vmatprep.subr.mxu1 %v10088_v9 }
 0x4d6   :  { %9481 = vmatpush3.msra.mxu0 %v6863_v49  ;;  %9482 = vmatprep.mubr.msk.f32.mxu0 %vm10089_vm1, %v10088_v9  ;;  %v5487_v15 = vand.u32 4294901760, %v5486_v6  ;;  %v8180_v6 = vld [vmem:[%s11143_s2 + $0x28] sm:$0xff] }
 0x4d7   :  { %9485 = vmatprep.subr.mxu0 %v10088_v9 }
 0x4db   :  { %9338 = vmatmul.mubr.f32.vlgmr.msra.gmra.mrb[10].mxu1 %v10829_v38  ;;  %v7244_v38 = vsel %vm1549_vm3, %v7238_v37, 0 }
 0x4dc   :  { %9371 = vmatpush3.msra.mxu1 %v10897_v53  ;;  %9372 = vmatprep.mubr.msk.f32.mxu1 %vm10089_vm1, %v10088_v9  ;;  %v7312_v31 = vand.u32 4294901760, %v7244_v38 }
 0x4dd   :  { %9483 = vmatmul.mubr.f32.vlgmr.msra.gmra.mrb[14].mxu0 %v10832_v39  ;;  %9375 = vmatprep.subr.mxu1 %v10088_v9 }
 0x4de   :  { %9486 = vmatpush3.msra.mxu0 %v10834_v29  ;;  %9487 = vmatprep.mubr.msk.f32.mxu0 %vm10089_vm1, %v10088_v9  ;;  %v7313_v29 = vsub.f32 %v7244_v38, %v7312_v31 }
 0x4df   :  { %9373 = vmatmul.mubr.f32.vlgmr.msra.gmra.mrb[12].mxu1 %v5487_v15  ;;  %9520 = vmatprep.subr.mxu0 %v10088_v9  ;;  %v8181_v15 = vld [vmem:[%s11143_s2 + $0x30] sm:$0xff] }
 0x4e0   :  { %9376 = vmatpush3.msra.mxu1 %v5498_v5  ;;  %9377 = vmatprep.mubr.msk.f32.mxu1 %vm10089_vm1, %v10088_v9  ;;  %v7314_v8 = vand.u32 4294901760, %v7313_v29  ;;  %v8182_v5 = vld [vmem:[%s11143_s2 + $0x38] sm:$0xff] }
 0x4e1   :  { %9380 = vmatprep.subr.mxu1 %v10088_v9 }
 0x4e2   :  { %v7315_v41 = vsub.f32 %v7313_v29, %v7314_v8 }
 0x4e4   :  { %v7316_v43 = vand.u32 4294901760, %v7315_v41 }
 0x4e5   :  { %9488 = vmatmul.mubr.f32.vlgmr.msra.gmra.mrb[14].mxu0 %v10832_v39  ;;  %v7247_v39 = vand.u32 4294901760, %v7241_v16 }
 0x4e6   :  { %9521 = vmatpush3.msra.mxu0 %v10924_v7  ;;  %9522 = vmatprep.mubr.msk.f32.mxu0 %vm10089_vm1, %v10088_v9 }
 0x4e7   :  { %9525 = vmatprep.subr.mxu0 %v10088_v9  ;;  %9378 = vmatmul.mubr.f32.vlgmr.msra.gmra.mrb[12].mxu1 %v10894_v36  ;;  %v7324_v17 = vsub.f32 %v7241_v16, %v7247_v39 }
 0x4e8   :  { %9381 = vmatpush3.msra.mxu1 %v10910_v61  ;;  %9382 = vmatprep.mubr.msk.f32.mxu1 %vm10089_vm1, %v10088_v9 }
 0x4e9   :  { %9523 = vmatmul.mubr.f32.vlgmr.msra.gmra.mrb[16].mxu0 %v7768_v26  ;;  %9385 = vmatprep.subr.mxu1 %v10088_v9  ;;  %v7325_v40 = vand.u32 4294901760, %v7324_v17  ;;  %v8297_v26 = vsub.f32 %v8176_v23, %v8199_v14 }
 0x4ea   :  { %9526 = vmatpush3.msra.mxu0 %v7779_v57  ;;  %9527 = vmatprep.mubr.msk.f32.mxu0 %vm10089_vm1, %v10088_v9 }
 0x4eb   :  { %9530 = vmatprep.subr.mxu0 %v10088_v9  ;;  %v7326_v42 = vsub.f32 %v7324_v17, %v7325_v40  ;;  %v8298_v1 = vand.u32 4294901760, %v8297_v26 }
 0x4ed   :  { %v7327_v22 = vand.u32 4294901760, %v7326_v42 }
 0x4ef   :  { %9383 = vmatmul.mubr.f32.vlgmr.msra.gmra.mrb[12].mxu1 %v10906_v54  ;;  %v8178_v54 = vld [vmem:[%s11143_s2 + $0x18] sm:$0xff] }
 0x4f0   :  { %9386 = vmatpush3.msra.mxu1 %v10897_v53  ;;  %9387 = vmatprep.mubr.msk.f32.mxu1 %vm10089_vm1, %v10088_v9  ;;  %v8205_v63 = vand.u32 4294901760, %v8178_v54 }
 0x4f1   :  { %9528 = vmatmul.mubr.f32.vlgmr.msra.gmra.mrb[16].mxu0 %v10922_v4  ;;  %9390 = vmatprep.subr.mxu1 %v10088_v9 }
 0x4f2   :  { %9531 = vmatpush3.msra.mxu0 %v7776_v11  ;;  %9532 = vmatprep.mubr.msk.f32.mxu0 %vm10089_vm1, %v10088_v9 }
 0x4f3   :  { %9535 = vmatprep.subr.mxu0 %v10088_v9 }
 0x4f7   :  { %9388 = vmatmul.mubr.f32.vlgmr.msra.gmra.mrb[12].mxu1 %v5485_v44 }
 0x4f8   :  { %9391 = vmatpush3.msra.mxu1 %v5496_v2  ;;  %9392 = vmatprep.mubr.msk.f32.mxu1 %vm10089_vm1, %v10088_v9 }
 0x4f9   :  { %9533 = vmatmul.mubr.f32.vlgmr.msra.gmra.mrb[16].mxu0 %v7765_v10  ;;  %9395 = vmatprep.subr.mxu1 %v10088_v9  ;;  %v8211_v10 = vand.u32 4294901760, %v8180_v6 }
 0x4fa   :  { %9536 = vmatpush3.msra.mxu0 %v10924_v7  ;;  %9537 = vmatprep.mubr.msk.f32.mxu0 %vm10089_vm1, %v10088_v9 }
 0x4fb   :  { %9540 = vmatprep.subr.mxu0 %v10088_v9  ;;  %v8325_v37 = vsub.f32 %v8180_v6, %v8211_v10 }
 0x4ff   :  { %9393 = vmatmul.mubr.f32.vlgmr.msra.gmra.mrb[12].mxu1 %v10894_v36 }
 0x500   :  { %9396 = vmatpush3.msra.mxu1 %v10897_v53  ;;  %9397 = vmatprep.mubr.msk.f32.mxu1 %vm10089_vm1, %v10088_v9  ;;  %v8196_v53 = vand.u32 4294901760, %v8175_v52 }
 0x501   :  { %9538 = vmatmul.mubr.f32.vlgmr.msra.gmra.mrb[16].mxu0 %v7766_v20  ;;  %9430 = vmatprep.subr.mxu1 %v10088_v9  ;;  %v8214_v20 = vand.u32 4294901760, %v8181_v15 }
 0x502   :  { %9541 = vmatpush3.msra.mxu0 %v7777_v21  ;;  %9542 = vmatprep.mubr.msk.f32.mxu0 %vm10089_vm1, %v10088_v9  ;;  %v11056_v0 = vpack.c.bf16 %v8199_v14, %v8196_v53  ;;  %v8217_v21 = vand.u32 4294901760, %v8182_v5  ;;  %v8290_v25 = vsub.f32 %v8175_v52, %v8196_v53 }
 0x503   :  { %9545 = vmatprep.subr.mxu0 %v10088_v9 }
 0x504   :  { %v11087_v24 = vpack.c.bf16 %v8217_v21, %v8214_v20  ;;  %v8291_v57 = vand.u32 4294901760, %v8290_v25 }
 0x506   :  { %v11093_v59 = vpack.c.bf16 %v8298_v1, %v8291_v57  ;;  %v8292_v62 = vsub.f32 %v8290_v25, %v8291_v57 }
 0x507   :  { %9398 = vmatmul.mubr.f32.vlgmr.msra.gmra.mrb[12].mxu1 %v10894_v36  ;;  %v8177_v36 = vld [vmem:[%s11143_s2 + $0x10] sm:$0xff] }
 0x508   :  { %9431 = vmatpush3.msra.mxu1 %v6333_v3  ;;  %9432 = vmatprep.mubr.msk.f32.mxu1 %vm10089_vm1, %v10088_v9  ;;  %v8202_v61 = vand.u32 4294901760, %v8177_v36 }
 0x509   :  { %9543 = vmatmul.mubr.f32.vlgmr.msra.gmra.mrb[16].mxu0 %v10922_v4  ;;  %9435 = vmatprep.subr.mxu1 %v10088_v9 }
 0x50a   :  { %9546 = vmatpush3.msra.mxu0 %v10924_v7  ;;  %9547 = vmatprep.mubr.msk.f32.mxu0 %vm10089_vm1, %v10088_v9  ;;  %v11058_v44 = vpack.c.bf16 %v8205_v63, %v8202_v61  ;;  %v8179_v7 = vld [vmem:[%s11143_s2 + $0x20] sm:$0xff] }
 0x50b   :  { %9433 = vmatmul.mubr.f32.vlgmr.msra.gmra.mrb[14].mxu1 %v6402_v19  ;;  %9713 = vmatprep.subr.bf16.mxu0 %v11056_v0  ;;  %v8208_v55 = vand.u32 4294901760, %v8179_v7 }
 0x50c   :  { %9436 = vmatpush3.msra.mxu1 %v6413_v34  ;;  %9437 = vmatprep.mubr.msk.f32.mxu1 %vm10089_vm1, %v10088_v9 }
 0x50d   :  { %9440 = vmatprep.subr.mxu1 %v10088_v9  ;;  %v11075_v11 = vpack.c.bf16 %v8211_v10, %v8208_v55  ;;  %v8318_v35 = vsub.f32 %v8179_v7, %v8208_v55 }
 0x50f   :  { %v11100_v14 = vpack.c.bf16 %v8325_v37, %v8318_v35 }
 0x511   :  { %9548 = vmatmul.mubr.f32.vlgmr.msra.gmra.mrb[16].mxu0 %v10922_v4 }
 0x512   :  { %9715 = vmatpush3.bf16.msra.mxu0 %v11056_v0 }
 0x513   :  { %9438 = vmatmul.mubr.f32.vlgmr.msra.gmra.mrb[14].mxu1 %v6398_v60  ;;  %9717 = vmatprep.subr.bf16.mxu0 %v11058_v44 }
 0x514   :  { %9441 = vmatpush3.msra.mxu1 %v6410_v30  ;;  %9442 = vmatprep.mubr.msk.f32.mxu1 %vm10089_vm1, %v10088_v9  ;;  %v8293_v30 = vand.u32 4294901760, %v8292_v62 }
 0x515   :  { %9445 = vmatprep.subr.mxu1 %v10088_v9 }
 0x516   :  { %9719 = vmatpush3.bf16.msra.mxu0 %v11058_v44 }
 0x517   :  { %9721 = vmatprep.subr.bf16.mxu0 %v11075_v11 }
 0x51a   :  { %9723 = vmatpush3.bf16.msra.mxu0 %v11075_v11 }
 0x51b   :  { %9443 = vmatmul.mubr.f32.vlgmr.msra.gmra.mrb[14].mxu1 %v6399_v58  ;;  %9725 = vmatprep.subr.bf16.mxu0 %v11087_v24  ;;  %v8311_v58 = vsub.f32 %v8178_v54, %v8205_v63 }
 0x51c   :  { %9446 = vmatpush3.msra.mxu1 %v6333_v3  ;;  %9447 = vmatprep.mubr.msk.f32.mxu1 %vm10089_vm1, %v10088_v9 }
 0x51d   :  { %9450 = vmatprep.subr.mxu1 %v10088_v9  ;;  %v8312_v33 = vand.u32 4294901760, %v8311_v58 }
 0x51e   :  { %9727 = vmatpush3.bf16.msra.mxu0 %v11087_v24 }
 0x523   :  { %9448 = vmatmul.mubr.f32.vlgmr.msra.gmra.mrb[14].mxu1 %v6400_v28 }
 0x524   :  { %9451 = vmatpush3.msra.mxu1 %v6411_v32  ;;  %9452 = vmatprep.mubr.msk.f32.mxu1 %vm10089_vm1, %v10088_v9 }
 0x525   :  { %9455 = vmatprep.subr.mxu1 %v10088_v9 }
 0x52b   :  { %9453 = vmatmul.mubr.f32.vlgmr.msra.gmra.mrb[14].mxu1 %v6398_v60 }
 0x52c   :  { %9456 = vmatpush3.msra.mxu1 %v6333_v3  ;;  %9457 = vmatprep.mubr.msk.f32.mxu1 %vm10089_vm1, %v10088_v9  ;;  %v8304_v3 = vsub.f32 %v8177_v36, %v8202_v61  ;;  %v9744_v36 = vpack.c.bf16 %v8297_v26, %v8290_v25 }
 0x52d   :  { %9490 = vmatprep.subr.mxu1 %v10088_v9 }
 0x52e   :  { %v8305_v32 = vand.u32 4294901760, %v8304_v3  ;;  %v9748_v53 = vpack.c.bf16 %v8311_v58, %v8304_v3 }
 0x530   :  { %v8306_v34 = vsub.f32 %v8304_v3, %v8305_v32  ;;  %v9780_v16 = vpack.c.bf16 %v8312_v33, %v8305_v32 }
 0x533   :  { %9458 = vmatmul.mubr.f32.vlgmr.msra.gmra.mrb[14].mxu1 %v6398_v60  ;;  %v8299_v60 = vsub.f32 %v8297_v26, %v8298_v1 }
 0x534   :  { %9491 = vmatpush3.msra.mxu1 %v7247_v39  ;;  %9492 = vmatprep.mubr.msk.f32.mxu1 %vm10089_vm1, %v10088_v9 }
 0x535   :  { %9495 = vmatprep.subr.mxu1 %v10088_v9  ;;  %v8300_v28 = vand.u32 4294901760, %v8299_v60 }
 0x537   :  { %9493 = vmatmul.mubr.f32.vlgmr.msra.gmra.mrb[16].mxu1 %v7316_v43  ;;  %v11096_v19 = vpack.c.bf16 %v8300_v28, %v8293_v30  ;;  %v8332_v43 = vsub.f32 %v8181_v15, %v8214_v20 }
 0x538   :  { %9496 = vmatpush3.msra.mxu1 %v7327_v22  ;;  %9497 = vmatprep.mubr.msk.f32.mxu1 %vm10089_vm1, %v10088_v9 }
 0x539   :  { %9500 = vmatprep.subr.mxu1 %v10088_v9  ;;  %9729 = vmatprep.subr.bf16.mxu0 %v11096_v19 }
 0x53f   :  { %9498 = vmatmul.mubr.f32.vlgmr.msra.gmra.mrb[16].mxu1 %v7312_v31 }
 0x540   :  { %9501 = vmatpush3.msra.mxu1 %v7324_v17  ;;  %9502 = vmatprep.mubr.msk.f32.mxu1 %vm10089_vm1, %v10088_v9  ;;  %v8326_v17 = vand.u32 4294901760, %v8325_v37 }
 0x541   :  { %9505 = vmatprep.subr.mxu1 %v10088_v9 }
 0x542   :  { %v8327_v42 = vsub.f32 %v8325_v37, %v8326_v17 }
 0x547   :  { %9503 = vmatmul.mubr.f32.vlgmr.msra.gmra.mrb[16].mxu1 %v7313_v29  ;;  %v8319_v29 = vand.u32 4294901760, %v8318_v35 }
 0x548   :  { %9506 = vmatpush3.msra.mxu1 %v7247_v39  ;;  %9507 = vmatprep.mubr.msk.f32.mxu1 %vm10089_vm1, %v10088_v9 }
 0x549   :  { %9510 = vmatprep.subr.mxu1 %v10088_v9  ;;  %v8320_v41 = vsub.f32 %v8318_v35, %v8319_v29 }
 0x54f   :  { %9508 = vmatmul.mubr.f32.vlgmr.msra.gmra.mrb[16].mxu1 %v7314_v8 }
 0x550   :  { %9511 = vmatpush3.msra.mxu1 %v7325_v40  ;;  %9512 = vmatprep.mubr.msk.f32.mxu1 %vm10089_vm1, %v10088_v9  ;;  %v9784_v40 = vpack.c.bf16 %v8326_v17, %v8319_v29 }
 0x551   :  { %9515 = vmatprep.subr.mxu1 %v10088_v9 }
 0x557   :  { %9513 = vmatmul.mubr.f32.vlgmr.msra.gmra.mrb[16].mxu1 %v7312_v31 }
 0x558   :  { %9516 = vmatpush3.msra.mxu1 %v7247_v39  ;;  %9517 = vmatprep.mubr.msk.f32.mxu1 %vm10089_vm1, %v10088_v9  ;;  %v8307_v39 = vand.u32 4294901760, %v8306_v34 }
 0x559   :  { %9761 = vmatprep.subr.bf16.mxu1 %v11056_v0 }
 0x55f   :  { %9518 = vmatmul.mubr.f32.vlgmr.msra.gmra.mrb[16].mxu1 %v7312_v31  ;;  %v8313_v31 = vsub.f32 %v8311_v58, %v8312_v33 }
 0x560   :  { %v11036_v47 = vpop.f32.mrb[10].mxu0  ;;  %9763 = vmatpush3.bf16.msra.mxu1 %v11056_v0 }
 0x561   :  { %v9369_v48 = vpop.f32.mrb[11].mxu0  ;;  %9765 = vmatprep.subr.bf16.mxu1 %v11058_v44  ;;  %v8314_v8 = vand.u32 4294901760, %v8313_v31 }
 0x562   :  { %v8339_v48 = vsub.f32 %v8182_v5, %v8217_v21 }
 0x563   :  { %v9732_v22 = vpack.c.bf16 %v8314_v8, %v8307_v39 }
 0x564   :  { %9767 = vmatpush3.bf16.msra.mxu1 %v11058_v44  ;;  %v11102_v54 = vpack.c.bf16 %v8339_v48, %v8332_v43 }
 0x565   :  { %9769 = vmatprep.subr.bf16.mxu1 %v11075_v11 }
 0x568   :  { %9771 = vmatpush3.bf16.msra.mxu1 %v11075_v11 }
 0x569   :  { %9773 = vmatprep.subr.bf16.mxu1 %v11087_v24 }
 0x56c   :  { %9775 = vmatpush3.bf16.msra.mxu1 %v11087_v24 }
 0x56d   :  { %9777 = vmatprep.subr.bf16.mxu1 %v11093_v59 }
 0x58c   :  { %v6312_v49 = vpop.f32.mrb[12].mxu0 }
 0x58d   :  { %8148 = vrot.lane.b32.xlu1 %v6312_v49, %s10096_s17  ;;  %v9429_v46 = vpop.f32.mrb[13].mxu0  ;;  %v8321_v49 = vand.u32 4294901760, %v8320_v41 }
 0x58e   :  { %v8328_v46 = vand.u32 4294901760, %v8327_v42 }
 0x5ae   :  { %v11039_v12 = vpop.f32.mrb[10].mxu1 }
 0x5af   :  { %v9339_v13 = vpop.f32.mrb[11].mxu1 }
 0x5b0   :  { %v8333_v13 = vand.u32 4294901760, %v8332_v43 }
 0x5b8   :  { %v7226_v18 = vpop.f32.mrb[14].mxu0 }
 0x5b9   :  { %8156 = vrot.lane.b32.xlu1 %v7226_v18, %s10094_s15  ;;  %v9489_v45 = vpop.f32.mrb[15].mxu0  ;;  %v8340_v18 = vand.u32 4294901760, %v8339_v48 }
 0x5ba   :  { %v9736_v45 = vpack.c.bf16 %v8328_v46, %v8321_v49 }
 0x5da   :  { %v5859_v27 = vpop.f32.mrb[12].mxu1 }
 0x5db   :  { %8146 = vrot.lane.b32.xlu0 %v5859_v27, %s10096_s17  ;;  %v9399_v50 = vpop.f32.mrb[13].mxu1  ;;  %v8334_v27 = vsub.f32 %v8332_v43, %v8333_v13 }
 0x5dc   :  { %v9788_v50 = vpack.c.bf16 %v8340_v18, %v8333_v13 }
 0x5e4   :  { %v8140_v9 = vpop.f32.mrb[16].mxu0 }
 0x5e5   :  { %8164 = vrot.lane.b32.xlu1 %v8140_v9, %s10092_s13  ;;  %v9549_v51 = vpop.f32.mrb[17].mxu0  ;;  %v8341_v9 = vsub.f32 %v8339_v48, %v8340_v18 }
 0x5e6   :  { %v8335_v51 = vand.u32 4294901760, %v8334_v27 }
 0x5e7   :  { %v8342_v52 = vand.u32 4294901760, %v8341_v9 }
 0x5e9   :  { %v9740_v23 = vpack.c.bf16 %v8342_v52, %v8335_v51 }
 0x5ff   :  { %v8149_v61 = vpop.permute.xlu1 %8148 }
 0x606   :  { %v6774_v2 = vpop.f32.mrb[14].mxu1 }
 0x607   :  { %8154 = vrot.lane.b32.xlu0 %v6774_v2, %s10094_s15  ;;  %v9459_v4 = vpop.f32.mrb[15].mxu1 }
 0x608   :  { %v8169_v4 = vsel %vm643_vm2, %v11036_v47, %v8149_v61 }
 0x62b   :  { %v8157_v63 = vpop.permute.xlu1 %8156 }
 0x62c   :  { %v8171_v7 = vsel %vm41_vm0, %v8169_v4, %v8157_v63 }
 0x632   :  { %v7688_v56 = vpop.f32.mrb[16].mxu1 }
 0x633   :  { %8162 = vrot.lane.b32.xlu0 %v7688_v56, %s10092_s13  ;;  %v9519_v38 = vpop.f32.mrb[17].mxu1 }
 0x64d   :  { %v8147_v55 = vpop.permute.xlu0 %8146 }
 0x64e   :  { %v8168_v20 = vsel %vm643_vm2, %v11039_v12, %v8147_v55 }
 0x657   :  { %v8165_v2 = vpop.permute.xlu1 %8164 }
 0x658   :  { %v8174_v6 = vsel %vm8172_vm4, %v8171_v7, %v8165_v2 }
 0x659   :  { %v8193_v10 = vsel %vm8188_vm5, %v8174_v6, 0 }
 0x65a   :  { %v8278_v15 = vand.u32 4294901760, %v8193_v10 }
 0x65c   :  { %v8279_v21 = vsub.f32 %v8193_v10, %v8278_v15 }
 0x65e   :  { %v8280_v60 = vand.u32 4294901760, %v8279_v21 }
 0x660   :  { %v8281_v58 = vsub.f32 %v8279_v21, %v8280_v60 }
 0x662   :  { %v8282_v12 = vand.u32 4294901760, %v8281_v58 }
 0x679   :  { %v8155_v5 = vpop.permute.xlu0 %8154 }
 0x67a   :  { %v8170_v25 = vsel %vm41_vm0, %v8168_v20, %v8155_v5 }
 0x6a5   :  { %v8163_v26 = vpop.permute.xlu0 %8162 }
 0x6a6   :  { %v8173_v57 = vsel %vm8172_vm4, %v8170_v25, %v8163_v26 }
 0x6a7   :  { %v8190_v1 = vsel %vm8188_vm5, %v8173_v57, 0 }
 0x6a8   :  { %v8268_v62 = vand.u32 4294901760, %v8190_v1 }
 0x6aa   :  { %v8269_v47 = vsub.f32 %v8190_v1, %v8268_v62 }
 0x6ac   :  { %v8270_v3 = vand.u32 4294901760, %v8269_v47 }
 0x6ae   :  { %9623 = vmatprep.mubr.f32.mxu1 %v8270_v3  ;;  %v8271_v30 = vsub.f32 %v8269_v47, %v8270_v3 }
 0x6af   :  { %9624 = vmatmul.mubr.f32.vlgmr.msra.gmra.mrb[18].mxu1 %v8280_v60 }
 0x6b0   :  { %9779 = vmatpush3.bf16.msra.mxu1 %v11093_v59  ;;  %9642 = vmatprep.mubr.f32.mxu1 %v8268_v62  ;;  %v8272_v28 = vand.u32 4294901760, %v8271_v30 }
 0x6b1   :  { %9781 = vmatprep.subr.bf16.mxu1 %v9780_v16 }
 0x6b2   :  { %9566 = vmatprep.mubr.f32.mxu0 %v8272_v28 }
 0x6b3   :  { %9567 = vmatmul.mubr.f32.vlgmr.msra.gmra.mrb[18].mxu0 %v8282_v12 }
 0x6b4   :  { %9731 = vmatpush3.bf16.msra.mxu0 %v11096_v19  ;;  %9783 = vmatpush3.bf16.msra.mxu1 %v9780_v16 }
 0x6b5   :  { %9585 = vmatprep.mubr.f32.mxu0 %v8268_v62  ;;  %9733 = vmatprep.subr.bf16.mxu0 %v9732_v22 }
 0x6b6   :  { %9785 = vmatprep.subr.bf16.mxu1 %v9784_v40 }
 0x6b8   :  { %9735 = vmatpush3.bf16.msra.mxu0 %v9732_v22  ;;  %9787 = vmatpush3.bf16.msra.mxu1 %v9784_v40 }
 0x6b9   :  { %9737 = vmatprep.subr.bf16.mxu0 %v9736_v45  ;;  %9789 = vmatprep.subr.bf16.mxu1 %v9788_v50 }
 0x6bc   :  { %9739 = vmatpush3.bf16.msra.mxu0 %v9736_v45  ;;  %9791 = vmatpush3.bf16.msra.mxu1 %v9788_v50 }
 0x6bd   :  { %9741 = vmatprep.subr.bf16.mxu0 %v9740_v23  ;;  %9793 = vmatprep.subr.bf16.mxu1 %v11056_v0 }
 0x6bf   :  { %9643 = vmatmul.mubr.f32.vlgmr.msra.gmra.mrb[18].mxu1 %v8278_v15 }
 0x6c0   :  { %9743 = vmatpush3.bf16.msra.mxu0 %v9740_v23  ;;  %9795 = vmatpush3.bf16.msra.mxu1 %v11056_v0 }
 0x6c1   :  { %9661 = vmatprep.mubr.f32.mxu1 %v8268_v62  ;;  %9745 = vmatprep.subr.bf16.mxu0 %v9744_v36 }
 0x6c2   :  { %9797 = vmatprep.subr.bf16.mxu1 %v11058_v44 }
 0x6c3   :  { %9586 = vmatmul.mubr.f32.vlgmr.msra.gmra.mrb[18].mxu0 %v8278_v15 }
 0x6c4   :  { %9747 = vmatpush3.bf16.msra.mxu0 %v9744_v36  ;;  %9604 = vmatprep.mubr.f32.mxu0 %v8269_v47 }
 0x6c5   :  { %9799 = vmatpush3.bf16.msra.mxu1 %v11058_v44  ;;  %9749 = vmatprep.subr.bf16.mxu0 %v9748_v53 }
 0x6c6   :  { %9801 = vmatprep.subr.bf16.mxu1 %v11075_v11 }
 0x6c8   :  { %9751 = vmatpush3.bf16.msra.mxu0 %v9748_v53 }
 0x6c9   :  { %9803 = vmatpush3.bf16.msra.mxu1 %v11075_v11  ;;  %9753 = vmatprep.subr.bf16.mxu0 %v11100_v14  ;;  %v8817_v11 = vld [vmem:[%s11143_s2 + $0x40] ss:$0 sm:$0xff] }
 0x6ca   :  { %9805 = vmatprep.subr.bf16.mxu1 %v11087_v24 }
 0x6cc   :  { %9755 = vmatpush3.bf16.msra.mxu0 %v11100_v14 }
 0x6cd   :  { %9807 = vmatpush3.bf16.msra.mxu1 %v11087_v24  ;;  %9757 = vmatprep.subr.bf16.mxu0 %v11102_v54 }
 0x6d0   :  { %9662 = vmatmul.mubr.f32.vlgmr.msra.gmra.mrb[18].mxu1 %v8278_v15  ;;  %9759 = vmatpush3.bf16.msra.mxu0 %v11102_v54 }
 0x6d3   :  { %9605 = vmatmul.mubr.f32.vlgmr.msra.gmra.mrb[18].mxu0 %v8279_v21 }
 0x7a3   :  { %v9663_v0 = vpop.f32.mrb[18].mxu1 }
 0x7a4   :  { %v8765_v44 = vpop.f32.mrb[19].mxu1 }
 0x7a6   :  { %v9606_v59 = vpop.f32.mrb[18].mxu0 }
 0x7a7   :  { %v9808_v32 = vadd.f32 %v9606_v59, %v8817_v11  ;;  %v8489_v33 = vpop.f32.mrb[19].mxu0 }
 0x7a8   :  { %v9810_v56 = vadd.f32 %v8817_v11, %v8489_v33 }
 0x7a9   :  { %v9809_v19 = vadd.f32 %v9808_v32, %v9663_v0 }
 0x7aa   :  { %v9811_v24 = vadd.f32 %v9810_v56, %v8765_v44 }
 0x7ab   :  { %8776 = vst.msk [vmem:[#allocation5 + $0x8] sm:$0xff] %vm41_vm0, %v9809_v19 }
 0x7ac   :  { %8775 = vst.msk [vmem:[#allocation5] sm:$0xff] %vm41_vm0, %v9811_v24 }
 0x7ad   :  { %10072 = shalt.err (!%p10069_p9)
}
 0x7ae   :  { %s10073_s8 = scalar_lea.hbm %s11145_s4, 256 }
 0x7af   :  { %p10074_p10 = scmp.ne.s32.totalorder %s11145_s4, %s10073_s8  ;;  %p10077_p11 = scmp.lt.u32.totalorder %s10073_s8, %s11145_s4 }
 0x7b1   :  { %p10079_p12 = pnand %p10077_p11, %p10074_p10 }
 0x7b3   :  { %10082 = shalt.err (!%p10079_p12)
}
 0x7b4   :  { %s10098_s0 = smov 128   ;;  %s10099_s12 = smov 8  }
 0x7b5   :  { %8788 = dma.vmem_to_hbm [thread:$0]  %s8783_s5, 256, %s11145_s4, [#allocation3], %s10098_s0, %s10098_s0, %s10099_s12  }
 0x7b6   :  { %10085 = dma.done.wait [#allocation3], 256  }
 0x7b7   :  { %10086 = vsyncadd [#allocation3], 4294967040 }
 0x7b8   :  { %8792 = vsyncpa [#allocation3], 1 }
 0x7b9   :  { %8793 = vsyncpa [#allocation4], 1 }

</bundles_post_ra>
